<compile_context>
chip_gen: v5e
topology: v5e:2x2
jax: 0.10.0
libtpu: 0.0.40
codegen_flags: <defaults>
</compile_context>

<pallas_src>
import functools
import math

import jax
import jax.numpy as jnp
import numpy as np
from jax import lax
from jax.experimental import pallas as pl
from jax.experimental.pallas import tpu as pltpu


# ----------------------------------------------------------------------------- #
# Pallas kernel
#   grid = (B, KT):  b axis "parallel" (megacore), k axis "arbitrary" (T-tile
#   reduction for the context).  All attention math runs once per batch row at
#   k == 0; every k accumulates one memory tile into the context on the MXU.
# ----------------------------------------------------------------------------- #
def _dca_kernel(aw_ref, q_ref, mem_ref, Wqt_ref, bW_ref, VrTt_ref, FUt_ref,
                bT_ref, vrow_ref, ctx_ref, attw_ref, attw_sc, acc_sc, *,
                T, TT, P, Kd, Ks, A, off_p, off_d, off_s, prior_taps):
    f32 = jnp.float32
    k = pl.program_id(1)

    @pl.when(k == 0)
    def _():
        aw_pad = aw_ref[0]                                  # [1, T_pad], time on lanes

        # ---- prior filter: causal conv, taps baked as compile-time immediates ----
        p = prior_taps[0] * aw_pad[:, off_p:off_p + T]
        for j in range(1, P):
            p = p + prior_taps[j] * aw_pad[:, off_p + j:off_p + j + T]
        p = jnp.log(jnp.maximum(p, 1e-6))                   # [1, T]

        # ---- dynamic filters from the query, pre-folded through T:  GTt [Kd*A, 1] ----
        q_col = q_ref[0]                                    # [Q, 1]
        h = jnp.tanh(jnp.dot(Wqt_ref[...], q_col, preferred_element_type=f32)
                     + bW_ref[...])                         # [A, 1]
        GTt = jnp.dot(VrTt_ref[...], h, preferred_element_type=f32)   # [Kd*A, 1]

        # ---- pre-tanh energy, accumulated as [A, T] (channels on sublanes) ----
        FUt = FUt_ref[...]                                  # [A, Ks]
        z = jnp.zeros((A, T), f32) + bT_ref[...]            # bias broadcast
        for j in range(Ks):                                 # static conv folded through U
            z = z + FUt[:, j:j + 1] * aw_pad[:, off_s + j:off_s + j + T]
        for j in range(Kd):                                 # dynamic conv folded through T
            z = z + GTt[j * A:(j + 1) * A, :] * aw_pad[:, off_d + j:off_d + j + T]

        # ---- energy = v^T tanh(z) + p ; softmax over T ----
        e = jnp.dot(vrow_ref[...], jnp.tanh(z), preferred_element_type=f32) + p  # [1, T]
        e = e - jnp.max(e, axis=-1, keepdims=True)
        ex = jnp.exp(e)
        attw = ex * pl.reciprocal(jnp.sum(ex, axis=-1, keepdims=True), approx=True)

        attw_sc[...] = attw                                  # kept resident over k
        attw_ref[0] = attw
        acc_sc[...] = jnp.zeros_like(acc_sc)

    # ---- context accumulation: one MXU matmul per streamed memory tile ----
    if TT == T:                                              # static: single tile over T
        a_k = attw_sc[...]                                   # [1, T]
    else:                                                    # TT is a 128-multiple
        start = pl.multiple_of(k * TT, 128)
        a_k = attw_sc[:, pl.ds(start, TT)]                   # [1, TT]
    mem = mem_ref[0]                                         # [TT, M]
    acc_sc[...] += jnp.dot(a_k.astype(mem.dtype), mem, preferred_element_type=f32)

    @pl.when(k == pl.num_programs(1) - 1)
    def _():
        ctx_ref[0] = acc_sc[...].astype(ctx_ref.dtype)


# ----------------------------------------------------------------------------- #
# Wrapper: algebraic folds + padding (glue), then one pallas_call
# ----------------------------------------------------------------------------- #
def dca_forward(query, memory, attn_weights, params,
                prior_filter_len, n_dynamic_filters, dynamic_filter_size,
                n_static_filters, static_filter_size, attn_dim):
    B, Q = query.shape
    _, T, M = memory.shape
    P, Kd, Ks = prior_filter_len, dynamic_filter_size, static_filter_size
    n_dyn, A = n_dynamic_filters, attn_dim

    # One padded slab of the attention weights covering all three convolutions.
    L = max(P - 1, (Kd - 1) // 2, (Ks - 1) // 2)
    R = max((Kd - 1) // 2, (Ks - 1) // 2)
    aw_pad = jnp.pad(attn_weights, ((0, 0), (L, R)))
    T_pad = T + L + R
    off_p = L - (P - 1)
    off_d = L - (Kd - 1) // 2
    off_s = L - (Ks - 1) // 2

    # --- fold the post-conv projections into the (tiny) filter banks ------------
    # static:  FUt[a, j] = (F_tap_j @ U)[a]
    FUt = params["Uw"].T @ params["Fw"]                          # [A, Ks]
    # dynamic: rows j*A:(j+1)*A of VrTt give (V_tap_j @ T)^T, applied to h as a column
    V3 = params["Vw"].reshape(A, n_dyn, Kd)                      # [A_in, n_dyn, Kd]
    VrTt = jnp.einsum("ifk,fa->kai", V3, params["Tw"]).reshape(Kd * A, A)
    Wqt = params["Wq"].T                                         # [A, Q]
    bW_col = params["bW"].reshape(A, 1)
    bT_col = params["bT"].reshape(A, 1)
    vrow = params["vrow"].reshape(1, A)
    # prior taps are a fixed registered buffer -> bake as compile-time constants
    prior_taps = tuple(float(v) for v in np.asarray(params["prior_flipped"]).reshape(-1))

    # --- T tiling for the streamed context reduction ----------------------------
    # NOTE: production encoder lengths / memory dims should be 128-multiples for
    # lane-dense stores; small/ragged T falls back to a single full-T tile.
    if T % 128 == 0:
        TT = min(T, 512)
        while T % TT != 0:
            TT -= 128
    else:
        TT = T
    KT = T // TT

    kernel = functools.partial(
        _dca_kernel, T=T, TT=TT, P=P, Kd=Kd, Ks=Ks, A=A,
        off_p=off_p, off_d=off_d, off_s=off_s, prior_taps=prior_taps)

    grid_spec = pltpu.PrefetchScalarGridSpec(
        num_scalar_prefetch=0,
        grid=(B, KT),
        in_specs=[
            pl.BlockSpec((1, 1, T_pad), lambda b, k: (b, 0, 0)),   # padded attn weights
            pl.BlockSpec((1, Q, 1), lambda b, k: (b, 0, 0)),       # query (column)
            pl.BlockSpec((1, TT, M), lambda b, k: (b, k, 0)),      # memory T-tile
            pl.BlockSpec((A, Q), lambda b, k: (0, 0)),             # W^T
            pl.BlockSpec((A, 1), lambda b, k: (0, 0)),             # bW
            pl.BlockSpec((Kd * A, A), lambda b, k: (0, 0)),        # V folded through T
            pl.BlockSpec((A, Ks), lambda b, k: (0, 0)),            # F folded through U
            pl.BlockSpec((A, 1), lambda b, k: (0, 0)),             # bT
            pl.BlockSpec((1, A), lambda b, k: (0, 0)),             # v
        ],
        out_specs=[
            pl.BlockSpec((1, 1, M), lambda b, k: (b, 0, 0)),       # context
            pl.BlockSpec((1, 1, T), lambda b, k: (b, 0, 0)),       # new attention weights
        ],
        scratch_shapes=[
            pltpu.VMEM((1, T), jnp.float32),                       # attw, resident over k
            pltpu.VMEM((1, M), jnp.float32),                       # context accumulator
        ],
    )

    ctx3, attw3 = pl.pallas_call(
        kernel,
        grid_spec=grid_spec,
        out_shape=(jax.ShapeDtypeStruct((B, 1, M), jnp.float32),
                   jax.ShapeDtypeStruct((B, 1, T), jnp.float32)),
        compiler_params=pltpu.CompilerParams(
            dimension_semantics=("parallel", "arbitrary"),
            vmem_limit_bytes=48 * 1024 * 1024),
    )(aw_pad[:, None, :], query[:, :, None], memory,
      Wqt, bW_col, VrTt, FUt, bT_col, vrow)
    return ctx3[:, 0, :], attw3[:, 0, :]


# ----------------------------------------------------------------------------- #
# Pure-JAX reference (mirrors the PyTorch ops with lax convolutions)
# ----------------------------------------------------------------------------- #
def dca_reference(query, memory, attn_weights, params,
                  prior_filter_len, n_dynamic_filters, dynamic_filter_size,
                  n_static_filters, static_filter_size, attn_dim):
    B, T = attn_weights.shape
    P, Kd, Ks = prior_filter_len, dynamic_filter_size, static_filter_size
    n_dyn = n_dynamic_filters
    aw = attn_weights
    dn = ("NCH", "OIH", "NCH")

    # prior (causal conv + log clamp)
    x = jnp.pad(aw, ((0, 0), (P - 1, 0)))[:, None, :]
    w = params["prior_flipped"].reshape(1, 1, P)
    p = lax.conv_general_dilated(x, w, (1,), "VALID", dimension_numbers=dn)[:, 0, :]
    p = jnp.log(jnp.maximum(p, 1e-6))

    # dynamic filters
    h = jnp.tanh(query @ params["Wq"] + params["bW"])
    G = h @ params["Vw"]                                       # [B, n_dyn*Kd]
    g = lax.conv_general_dilated(
        aw[None], G.reshape(B * n_dyn, 1, Kd), (1,),
        [((Kd - 1) // 2, (Kd - 1) // 2)], dimension_numbers=dn,
        feature_group_count=B)                                 # [1, B*n_dyn, T]
    g = g.reshape(B, n_dyn, T).transpose(0, 2, 1)              # [B, T, n_dyn]

    # static filters
    f = lax.conv_general_dilated(
        aw[:, None, :], params["Fw"][:, None, :], (1,),
        [((Ks - 1) // 2, (Ks - 1) // 2)], dimension_numbers=dn)  # [B, n_stat, T]
    f = f.transpose(0, 2, 1)

    z = jnp.tanh(f @ params["Uw"] + g @ params["Tw"] + params["bT"])
    energy = (z @ params["vrow"].T)[..., 0] + p
    attw = jax.nn.softmax(energy, axis=-1)
    ctx = jnp.einsum("bt,btm->bm", attw, memory)
    return ctx, attw


def _betabinom_pmf(k, n, a, b):
    lg = math.lgamma
    return math.exp(lg(n + 1) - lg(k + 1) - lg(n - k + 1)
                    + lg(k + a) + lg(n - k + b) - lg(n + a + b)
                    + lg(a + b) - lg(a) - lg(b))


if __name__ == "__main__":
    # Module hyper-parameters (small but consistent with the PyTorch __init__)
    B, T_enc, memory_dim = 2, 16, 8
    query_dim, attn_dim = 16, 32
    n_static_filters, static_filter_size = 8, 7
    n_dynamic_filters, dynamic_filter_size = 4, 5
    prior_filter_len, alpha, beta = 11, 0.1, 0.9

    # prior filter buffer (betabinom pmf, flipped — as in register_buffer)
    pmf = np.array([_betabinom_pmf(k, prior_filter_len - 1, alpha, beta)
                    for k in range(prior_filter_len)], dtype=np.float32)
    prior_flipped = jnp.asarray(pmf[::-1].copy())

    # deterministic parameter init (synthetic weights; [in, out] layout)
    key = jax.random.PRNGKey(0)
    ks = jax.random.split(key, 10)
    s = 0.1
    params = {
        "prior_flipped": prior_flipped,
        "Wq": jax.random.normal(ks[0], (query_dim, attn_dim), jnp.float32) * s,
        "bW": jax.random.normal(ks[1], (1, attn_dim), jnp.float32) * s,
        "Vw": jax.random.normal(ks[2], (attn_dim, n_dynamic_filters * dynamic_filter_size), jnp.float32) * s,
        "Fw": jax.random.normal(ks[3], (n_static_filters, static_filter_size), jnp.float32) * s,
        "Uw": jax.random.normal(ks[4], (n_static_filters, attn_dim), jnp.float32) * s,
        "Tw": jax.random.normal(ks[5], (n_dynamic_filters, attn_dim), jnp.float32) * s,
        "bT": jax.random.normal(ks[6], (1, attn_dim), jnp.float32) * s,
        "vrow": jax.random.normal(ks[7], (1, attn_dim), jnp.float32) * s,
    }

    query = jax.random.normal(ks[8], (B, query_dim), jnp.float32)
    memory = jax.random.normal(ks[9], (B, T_enc, memory_dim), jnp.float32)

    # attention state as produced by _init_attention
    attn_weights = jnp.zeros((B, T_enc), jnp.float32).at[:, 0].set(1.0)

    ctx, new_attw = dca_forward(
        query, memory, attn_weights, params,
        prior_filter_len, n_dynamic_filters, dynamic_filter_size,
        n_static_filters, static_filter_size, attn_dim)
    ctx = jax.block_until_ready(ctx)
    new_attw = jax.block_until_ready(new_attw)

    ctx_ref, attw_ref = dca_reference(
        query, memory, attn_weights, params,
        prior_filter_len, n_dynamic_filters, dynamic_filter_size,
        n_static_filters, static_filter_size, attn_dim)

    np.testing.assert_allclose(np.asarray(ctx), np.asarray(ctx_ref), rtol=1e-3, atol=1e-3)
    np.testing.assert_allclose(np.asarray(new_attw), np.asarray(attw_ref), rtol=1e-3, atol=1e-3)
    print("KERNEL_OK")
</pallas_src>

<mosaic_0001>
module attributes {stable_mosaic.version = 11 : i64} {
  func.func @_dca_kernel(%arg0: i32, %arg1: i32, %arg2: memref<1x1x29xf32, #tpu.memory_space<vmem>>, %arg3: memref<1x16x1xf32, #tpu.memory_space<vmem>>, %arg4: memref<1x16x8xf32, #tpu.memory_space<vmem>>, %arg5: memref<32x16xf32, #tpu.memory_space<vmem>>, %arg6: memref<32x1xf32, #tpu.memory_space<vmem>>, %arg7: memref<160x32xf32, #tpu.memory_space<vmem>>, %arg8: memref<32x7xf32, #tpu.memory_space<vmem>>, %arg9: memref<32x1xf32, #tpu.memory_space<vmem>>, %arg10: memref<1x32xf32, #tpu.memory_space<vmem>>, %arg11: memref<1x1x8xf32, #tpu.memory_space<vmem>>, %arg12: memref<1x1x16xf32, #tpu.memory_space<vmem>>, %arg13: memref<1x16xf32, #tpu.memory_space<vmem>>, %arg14: memref<1x8xf32, #tpu.memory_space<vmem>>) attributes {dimension_semantics = [#tpu.dimension_semantics<parallel>, #tpu.dimension_semantics<arbitrary>], iteration_bounds = array<i64: 2, 1>, scalar_prefetch = 0 : i64, scratch_operands = 2 : i64, tpu.core_type = #tpu.core_type<tc>, window_params = [{transform_indices = @transform_0, window_bounds = array<i64: 1, 1, 29>}, {transform_indices = @transform_1, window_bounds = array<i64: 1, 16, 1>}, {transform_indices = @transform_2, window_bounds = array<i64: 1, 16, 8>}, {pipeline_mode = #tpu.pipeline_mode<synchronous>, transform_indices = @transform_3, window_bounds = array<i64: 32, 16>}, {pipeline_mode = #tpu.pipeline_mode<synchronous>, transform_indices = @transform_4, window_bounds = array<i64: 32, 1>}, {pipeline_mode = #tpu.pipeline_mode<synchronous>, transform_indices = @transform_5, window_bounds = array<i64: 160, 32>}, {pipeline_mode = #tpu.pipeline_mode<synchronous>, transform_indices = @transform_6, window_bounds = array<i64: 32, 7>}, {pipeline_mode = #tpu.pipeline_mode<synchronous>, transform_indices = @transform_7, window_bounds = array<i64: 32, 1>}, {pipeline_mode = #tpu.pipeline_mode<synchronous>, transform_indices = @transform_8, window_bounds = array<i64: 1, 32>}, {transform_indices = @transform_9, window_bounds = array<i64: 1, 1, 8>}, {transform_indices = @transform_10, window_bounds = array<i64: 1, 1, 16>}]} {
    %c0_i32 = arith.constant 0 : i32
    %0 = arith.cmpi eq, %arg1, %c0_i32 : i32
    %1 = arith.extui %0 : i1 to i32
    %c0_i32_0 = arith.constant 0 : i32
    %2 = arith.cmpi ne, %1, %c0_i32_0 : i32
    scf.if %2 {
      %c0_11 = arith.constant 0 : index
      %c0_12 = arith.constant 0 : index
      %c0_13 = arith.constant 0 : index
      %13 = vector.load %arg2[%c0_11, %c0_12, %c0_13] : memref<1x1x29xf32, #tpu.memory_space<vmem>>, vector<1x1x29xf32>
      %14 = vector.shape_cast %13 : vector<1x1x29xf32> to vector<1x29xf32>
      %15 = vector.extract_strided_slice %14 {offsets = [0, 0], sizes = [1, 16], strides = [1, 1]} : vector<1x29xf32> to vector<1x16xf32>
      %cst_14 = arith.constant 0.0131728351 : f32
      %16 = vector.broadcast %cst_14 : f32 to vector<1x16xf32>
      %17 = arith.mulf %16, %15 : vector<1x16xf32>
      %18 = vector.extract_strided_slice %14 {offsets = [0, 1], sizes = [1, 16], strides = [1, 1]} : vector<1x29xf32> to vector<1x16xf32>
      %cst_15 = arith.constant 0.0130280787 : f32
      %19 = vector.broadcast %cst_15 : f32 to vector<1x16xf32>
      %20 = arith.mulf %19, %18 : vector<1x16xf32>
      %21 = arith.addf %17, %20 : vector<1x16xf32>
      %22 = vector.extract_strided_slice %14 {offsets = [0, 2], sizes = [1, 16], strides = [1, 1]} : vector<1x29xf32> to vector<1x16xf32>
      %cst_16 = arith.constant 0.0137518616 : f32
      %23 = vector.broadcast %cst_16 : f32 to vector<1x16xf32>
      %24 = arith.mulf %23, %22 : vector<1x16xf32>
      %25 = arith.addf %21, %24 : vector<1x16xf32>
      %26 = vector.extract_strided_slice %14 {offsets = [0, 3], sizes = [1, 16], strides = [1, 1]} : vector<1x29xf32> to vector<1x16xf32>
      %cst_17 = arith.constant 0.0149785532 : f32
      %27 = vector.broadcast %cst_17 : f32 to vector<1x16xf32>
      %28 = arith.mulf %27, %26 : vector<1x16xf32>
      %29 = arith.addf %25, %28 : vector<1x16xf32>
      %30 = vector.extract_strided_slice %14 {offsets = [0, 4], sizes = [1, 16], strides = [1, 1]} : vector<1x29xf32> to vector<1x16xf32>
      %cst_18 = arith.constant 0.0167587902 : f32
      %31 = vector.broadcast %cst_18 : f32 to vector<1x16xf32>
      %32 = arith.mulf %31, %30 : vector<1x16xf32>
      %33 = arith.addf %29, %32 : vector<1x16xf32>
      %34 = vector.extract_strided_slice %14 {offsets = [0, 5], sizes = [1, 16], strides = [1, 1]} : vector<1x29xf32> to vector<1x16xf32>
      %cst_19 = arith.constant 1.932190e-02 : f32
      %35 = vector.broadcast %cst_19 : f32 to vector<1x16xf32>
      %36 = arith.mulf %35, %34 : vector<1x16xf32>
      %37 = arith.addf %33, %36 : vector<1x16xf32>
      %38 = vector.extract_strided_slice %14 {offsets = [0, 6], sizes = [1, 16], strides = [1, 1]} : vector<1x29xf32> to vector<1x16xf32>
      %cst_20 = arith.constant 0.0231705718 : f32
      %39 = vector.broadcast %cst_20 : f32 to vector<1x16xf32>
      %40 = arith.mulf %39, %38 : vector<1x16xf32>
      %41 = arith.addf %37, %40 : vector<1x16xf32>
      %42 = vector.extract_strided_slice %14 {offsets = [0, 7], sizes = [1, 16], strides = [1, 1]} : vector<1x29xf32> to vector<1x16xf32>
      %cst_21 = arith.constant 0.0294704046 : f32
      %43 = vector.broadcast %cst_21 : f32 to vector<1x16xf32>
      %44 = arith.mulf %43, %42 : vector<1x16xf32>
      %45 = arith.addf %41, %44 : vector<1x16xf32>
      %46 = vector.extract_strided_slice %14 {offsets = [0, 8], sizes = [1, 16], strides = [1, 1]} : vector<1x29xf32> to vector<1x16xf32>
      %cst_22 = arith.constant 0.0415743217 : f32
      %47 = vector.broadcast %cst_22 : f32 to vector<1x16xf32>
      %48 = arith.mulf %47, %46 : vector<1x16xf32>
      %49 = arith.addf %45, %48 : vector<1x16xf32>
      %50 = vector.extract_strided_slice %14 {offsets = [0, 9], sizes = [1, 16], strides = [1, 1]} : vector<1x29xf32> to vector<1x16xf32>
      %cst_23 = arith.constant 0.0747497901 : f32
      %51 = vector.broadcast %cst_23 : f32 to vector<1x16xf32>
      %52 = arith.mulf %51, %50 : vector<1x16xf32>
      %53 = arith.addf %49, %52 : vector<1x16xf32>
      %54 = vector.extract_strided_slice %14 {offsets = [0, 10], sizes = [1, 16], strides = [1, 1]} : vector<1x29xf32> to vector<1x16xf32>
      %cst_24 = arith.constant 0.740022898 : f32
      %55 = vector.broadcast %cst_24 : f32 to vector<1x16xf32>
      %56 = arith.mulf %55, %54 : vector<1x16xf32>
      %57 = arith.addf %53, %56 : vector<1x16xf32>
      %cst_25 = arith.constant 9.99999997E-7 : f32
      %58 = vector.broadcast %cst_25 : f32 to vector<1x16xf32>
      %59 = arith.maximumf %57, %58 : vector<1x16xf32>
      %60 = math.log %59 : vector<1x16xf32>
      %c0_26 = arith.constant 0 : index
      %c0_27 = arith.constant 0 : index
      %c0_28 = arith.constant 0 : index
      %61 = vector.load %arg3[%c0_26, %c0_27, %c0_28] : memref<1x16x1xf32, #tpu.memory_space<vmem>>, vector<1x16x1xf32>
      %62 = vector.shape_cast %61 : vector<1x16x1xf32> to vector<16x1xf32>
      %c0_29 = arith.constant 0 : index
      %c0_30 = arith.constant 0 : index
      %63 = vector.load %arg5[%c0_29, %c0_30] : memref<32x16xf32, #tpu.memory_space<vmem>>, vector<32x16xf32>
      %cst_31 = arith.constant dense<0.000000e+00> : vector<32x1xf32>
      %64 = tpu.matmul %63, %62, %cst_31 {dimension_numbers = #tpu.dot_dimension_numbers<[1], [0], [0], [1], [0, 0, 1, 1], [], []>} : vector<32x16xf32>, vector<16x1xf32>, vector<32x1xf32> -> vector<32x1xf32>
      %c0_32 = arith.constant 0 : index
      %c0_33 = arith.constant 0 : index
      %65 = vector.load %arg6[%c0_32, %c0_33] : memref<32x1xf32, #tpu.memory_space<vmem>>, vector<32x1xf32>
      %66 = arith.addf %64, %65 : vector<32x1xf32>
      %67 = math.tanh %66 : vector<32x1xf32>
      %c0_34 = arith.constant 0 : index
      %c0_35 = arith.constant 0 : index
      %68 = vector.load %arg7[%c0_34, %c0_35] : memref<160x32xf32, #tpu.memory_space<vmem>>, vector<160x32xf32>
      %cst_36 = arith.constant dense<0.000000e+00> : vector<160x1xf32>
      %69 = tpu.matmul %68, %67, %cst_36 {dimension_numbers = #tpu.dot_dimension_numbers<[1], [0], [0], [1], [0, 0, 1, 1], [], []>} : vector<160x32xf32>, vector<32x1xf32>, vector<160x1xf32> -> vector<160x1xf32>
      %c0_37 = arith.constant 0 : index
      %c0_38 = arith.constant 0 : index
      %70 = vector.load %arg8[%c0_37, %c0_38] : memref<32x7xf32, #tpu.memory_space<vmem>>, vector<32x7xf32>
      %cst_39 = arith.constant 0.000000e+00 : f32
      %71 = vector.broadcast %cst_39 : f32 to vector<32x16xf32>
      %c0_40 = arith.constant 0 : index
      %c0_41 = arith.constant 0 : index
      %72 = vector.load %arg9[%c0_40, %c0_41] : memref<32x1xf32, #tpu.memory_space<vmem>>, vector<32x1xf32>
      %73 = vector.broadcast %72 : vector<32x1xf32> to vector<32x16xf32>
      %74 = arith.addf %71, %73 : vector<32x16xf32>
      %75 = vector.extract_strided_slice %70 {offsets = [0, 0], sizes = [32, 1], strides = [1, 1]} : vector<32x7xf32> to vector<32x1xf32>
      %76 = vector.extract_strided_slice %14 {offsets = [0, 7], sizes = [1, 16], strides = [1, 1]} : vector<1x29xf32> to vector<1x16xf32>
      %77 = vector.broadcast %75 : vector<32x1xf32> to vector<32x16xf32>
      %78 = vector.broadcast %76 : vector<1x16xf32> to vector<32x16xf32>
      %79 = arith.mulf %77, %78 : vector<32x16xf32>
      %80 = arith.addf %74, %79 : vector<32x16xf32>
      %81 = vector.extract_strided_slice %70 {offsets = [0, 1], sizes = [32, 1], strides = [1, 1]} : vector<32x7xf32> to vector<32x1xf32>
      %82 = vector.extract_strided_slice %14 {offsets = [0, 8], sizes = [1, 16], strides = [1, 1]} : vector<1x29xf32> to vector<1x16xf32>
      %83 = vector.broadcast %81 : vector<32x1xf32> to vector<32x16xf32>
      %84 = vector.broadcast %82 : vector<1x16xf32> to vector<32x16xf32>
      %85 = arith.mulf %83, %84 : vector<32x16xf32>
      %86 = arith.addf %80, %85 : vector<32x16xf32>
      %87 = vector.extract_strided_slice %70 {offsets = [0, 2], sizes = [32, 1], strides = [1, 1]} : vector<32x7xf32> to vector<32x1xf32>
      %88 = vector.extract_strided_slice %14 {offsets = [0, 9], sizes = [1, 16], strides = [1, 1]} : vector<1x29xf32> to vector<1x16xf32>
      %89 = vector.broadcast %87 : vector<32x1xf32> to vector<32x16xf32>
      %90 = vector.broadcast %88 : vector<1x16xf32> to vector<32x16xf32>
      %91 = arith.mulf %89, %90 : vector<32x16xf32>
      %92 = arith.addf %86, %91 : vector<32x16xf32>
      %93 = vector.extract_strided_slice %70 {offsets = [0, 3], sizes = [32, 1], strides = [1, 1]} : vector<32x7xf32> to vector<32x1xf32>
      %94 = vector.extract_strided_slice %14 {offsets = [0, 10], sizes = [1, 16], strides = [1, 1]} : vector<1x29xf32> to vector<1x16xf32>
      %95 = vector.broadcast %93 : vector<32x1xf32> to vector<32x16xf32>
      %96 = vector.broadcast %94 : vector<1x16xf32> to vector<32x16xf32>
      %97 = arith.mulf %95, %96 : vector<32x16xf32>
      %98 = arith.addf %92, %97 : vector<32x16xf32>
      %99 = vector.extract_strided_slice %70 {offsets = [0, 4], sizes = [32, 1], strides = [1, 1]} : vector<32x7xf32> to vector<32x1xf32>
      %100 = vector.extract_strided_slice %14 {offsets = [0, 11], sizes = [1, 16], strides = [1, 1]} : vector<1x29xf32> to vector<1x16xf32>
      %101 = vector.broadcast %99 : vector<32x1xf32> to vector<32x16xf32>
      %102 = vector.broadcast %100 : vector<1x16xf32> to vector<32x16xf32>
      %103 = arith.mulf %101, %102 : vector<32x16xf32>
      %104 = arith.addf %98, %103 : vector<32x16xf32>
      %105 = vector.extract_strided_slice %70 {offsets = [0, 5], sizes = [32, 1], strides = [1, 1]} : vector<32x7xf32> to vector<32x1xf32>
      %106 = vector.extract_strided_slice %14 {offsets = [0, 12], sizes = [1, 16], strides = [1, 1]} : vector<1x29xf32> to vector<1x16xf32>
      %107 = vector.broadcast %105 : vector<32x1xf32> to vector<32x16xf32>
      %108 = vector.broadcast %106 : vector<1x16xf32> to vector<32x16xf32>
      %109 = arith.mulf %107, %108 : vector<32x16xf32>
      %110 = arith.addf %104, %109 : vector<32x16xf32>
      %111 = vector.extract_strided_slice %70 {offsets = [0, 6], sizes = [32, 1], strides = [1, 1]} : vector<32x7xf32> to vector<32x1xf32>
      %112 = vector.extract_strided_slice %14 {offsets = [0, 13], sizes = [1, 16], strides = [1, 1]} : vector<1x29xf32> to vector<1x16xf32>
      %113 = vector.broadcast %111 : vector<32x1xf32> to vector<32x16xf32>
      %114 = vector.broadcast %112 : vector<1x16xf32> to vector<32x16xf32>
      %115 = arith.mulf %113, %114 : vector<32x16xf32>
      %116 = arith.addf %110, %115 : vector<32x16xf32>
      %117 = vector.extract_strided_slice %69 {offsets = [0, 0], sizes = [32, 1], strides = [1, 1]} : vector<160x1xf32> to vector<32x1xf32>
      %118 = vector.extract_strided_slice %14 {offsets = [0, 8], sizes = [1, 16], strides = [1, 1]} : vector<1x29xf32> to vector<1x16xf32>
      %119 = vector.broadcast %117 : vector<32x1xf32> to vector<32x16xf32>
      %120 = vector.broadcast %118 : vector<1x16xf32> to vector<32x16xf32>
      %121 = arith.mulf %119, %120 : vector<32x16xf32>
      %122 = arith.addf %116, %121 : vector<32x16xf32>
      %123 = vector.extract_strided_slice %69 {offsets = [32, 0], sizes = [32, 1], strides = [1, 1]} : vector<160x1xf32> to vector<32x1xf32>
      %124 = vector.extract_strided_slice %14 {offsets = [0, 9], sizes = [1, 16], strides = [1, 1]} : vector<1x29xf32> to vector<1x16xf32>
      %125 = vector.broadcast %123 : vector<32x1xf32> to vector<32x16xf32>
      %126 = vector.broadcast %124 : vector<1x16xf32> to vector<32x16xf32>
      %127 = arith.mulf %125, %126 : vector<32x16xf32>
      %128 = arith.addf %122, %127 : vector<32x16xf32>
      %129 = vector.extract_strided_slice %69 {offsets = [64, 0], sizes = [32, 1], strides = [1, 1]} : vector<160x1xf32> to vector<32x1xf32>
      %130 = vector.extract_strided_slice %14 {offsets = [0, 10], sizes = [1, 16], strides = [1, 1]} : vector<1x29xf32> to vector<1x16xf32>
      %131 = vector.broadcast %129 : vector<32x1xf32> to vector<32x16xf32>
      %132 = vector.broadcast %130 : vector<1x16xf32> to vector<32x16xf32>
      %133 = arith.mulf %131, %132 : vector<32x16xf32>
      %134 = arith.addf %128, %133 : vector<32x16xf32>
      %135 = vector.extract_strided_slice %69 {offsets = [96, 0], sizes = [32, 1], strides = [1, 1]} : vector<160x1xf32> to vector<32x1xf32>
      %136 = vector.extract_strided_slice %14 {offsets = [0, 11], sizes = [1, 16], strides = [1, 1]} : vector<1x29xf32> to vector<1x16xf32>
      %137 = vector.broadcast %135 : vector<32x1xf32> to vector<32x16xf32>
      %138 = vector.broadcast %136 : vector<1x16xf32> to vector<32x16xf32>
      %139 = arith.mulf %137, %138 : vector<32x16xf32>
      %140 = arith.addf %134, %139 : vector<32x16xf32>
      %141 = vector.extract_strided_slice %69 {offsets = [128, 0], sizes = [32, 1], strides = [1, 1]} : vector<160x1xf32> to vector<32x1xf32>
      %142 = vector.extract_strided_slice %14 {offsets = [0, 12], sizes = [1, 16], strides = [1, 1]} : vector<1x29xf32> to vector<1x16xf32>
      %143 = vector.broadcast %141 : vector<32x1xf32> to vector<32x16xf32>
      %144 = vector.broadcast %142 : vector<1x16xf32> to vector<32x16xf32>
      %145 = arith.mulf %143, %144 : vector<32x16xf32>
      %146 = arith.addf %140, %145 : vector<32x16xf32>
      %c0_42 = arith.constant 0 : index
      %c0_43 = arith.constant 0 : index
      %147 = vector.load %arg10[%c0_42, %c0_43] : memref<1x32xf32, #tpu.memory_space<vmem>>, vector<1x32xf32>
      %148 = math.tanh %146 : vector<32x16xf32>
      %cst_44 = arith.constant dense<0.000000e+00> : vector<1x16xf32>
      %149 = tpu.matmul %147, %148, %cst_44 {dimension_numbers = #tpu.dot_dimension_numbers<[1], [0], [0], [1], [0, 0, 1, 1], [], []>} : vector<1x32xf32>, vector<32x16xf32>, vector<1x16xf32> -> vector<1x16xf32>
      %150 = arith.addf %149, %60 : vector<1x16xf32>
      %cst_45 = arith.constant dense<0xFF800000> : vector<1xf32>
      %151 = vector.multi_reduction <maximumf>, %150, %cst_45 [1] : vector<1x16xf32> to vector<1xf32>
      %152 = vector.shape_cast %151 : vector<1xf32> to vector<1x1xf32>
      %153 = vector.broadcast %152 : vector<1x1xf32> to vector<1x16xf32>
      %154 = arith.subf %150, %153 : vector<1x16xf32>
      %155 = math.exp %154 : vector<1x16xf32>
      %cst_46 = arith.constant dense<0.000000e+00> : vector<1xf32>
      %156 = vector.multi_reduction <add>, %155, %cst_46 [1] : vector<1x16xf32> to vector<1xf32>
      %157 = vector.shape_cast %156 : vector<1xf32> to vector<1x1xf32>
      %158 = tpu.reciprocal %157 {approx = true} : vector<1x1xf32> -> vector<1x1xf32>
      %159 = vector.broadcast %158 : vector<1x1xf32> to vector<1x16xf32>
      %160 = arith.mulf %155, %159 : vector<1x16xf32>
      %c0_47 = arith.constant 0 : index
      %c0_48 = arith.constant 0 : index
      %161 = vector.load %arg13[%c0_47, %c0_48] : memref<1x16xf32, #tpu.memory_space<vmem>>, vector<1x16xf32>
      tpu.vector_store %arg13[%c0_47, %c0_48], %160 {strides = array<i32>} : memref<1x16xf32, #tpu.memory_space<vmem>>, vector<1x16xf32>,
      %c0_49 = arith.constant 0 : index
      %c0_50 = arith.constant 0 : index
      %c0_51 = arith.constant 0 : index
      %162 = vector.load %arg12[%c0_49, %c0_50, %c0_51] : memref<1x1x16xf32, #tpu.memory_space<vmem>>, vector<1x1x16xf32>
      %163 = vector.shape_cast %162 : vector<1x1x16xf32> to vector<1x16xf32>
      %164 = vector.shape_cast %160 : vector<1x16xf32> to vector<1x1x16xf32>
      tpu.vector_store %arg12[%c0_49, %c0_50, %c0_51], %164 {strides = array<i32>} : memref<1x1x16xf32, #tpu.memory_space<vmem>>, vector<1x1x16xf32>,
      %cst_52 = arith.constant 0.000000e+00 : f32
      %165 = vector.broadcast %cst_52 : f32 to vector<1x8xf32>
      %c0_53 = arith.constant 0 : index
      %c0_54 = arith.constant 0 : index
      %166 = vector.load %arg14[%c0_53, %c0_54] : memref<1x8xf32, #tpu.memory_space<vmem>>, vector<1x8xf32>
      tpu.vector_store %arg14[%c0_53, %c0_54], %165 {strides = array<i32>} : memref<1x8xf32, #tpu.memory_space<vmem>>, vector<1x8xf32>,
    } else {
    }
    %c0 = arith.constant 0 : index
    %c0_1 = arith.constant 0 : index
    %3 = vector.load %arg13[%c0, %c0_1] : memref<1x16xf32, #tpu.memory_space<vmem>>, vector<1x16xf32>
    %c0_2 = arith.constant 0 : index
    %c0_3 = arith.constant 0 : index
    %c0_4 = arith.constant 0 : index
    %4 = vector.load %arg4[%c0_2, %c0_3, %c0_4] : memref<1x16x8xf32, #tpu.memory_space<vmem>>, vector<1x16x8xf32>
    %5 = vector.shape_cast %4 : vector<1x16x8xf32> to vector<16x8xf32>
    %c0_5 = arith.constant 0 : index
    %c0_6 = arith.constant 0 : index
    %6 = vector.load %arg14[%c0_5, %c0_6] : memref<1x8xf32, #tpu.memory_space<vmem>>, vector<1x8xf32>
    %cst = arith.constant dense<0.000000e+00> : vector<1x8xf32>
    %7 = tpu.matmul %3, %5, %cst {dimension_numbers = #tpu.dot_dimension_numbers<[1], [0], [0], [1], [0, 0, 1, 1], [], []>} : vector<1x16xf32>, vector<16x8xf32>, vector<1x8xf32> -> vector<1x8xf32>
    %8 = arith.addf %6, %7 : vector<1x8xf32>
    %c0_7 = arith.constant 0 : index
    %c0_8 = arith.constant 0 : index
    %9 = vector.load %arg14[%c0_7, %c0_8] : memref<1x8xf32, #tpu.memory_space<vmem>>, vector<1x8xf32>
    tpu.vector_store %arg14[%c0_7, %c0_8], %8 {strides = array<i32>} : memref<1x8xf32, #tpu.memory_space<vmem>>, vector<1x8xf32>,
    %c0_i32_9 = arith.constant 0 : i32
    %10 = arith.cmpi eq, %arg1, %c0_i32_9 : i32
    %11 = arith.extui %10 : i1 to i32
    %c0_i32_10 = arith.constant 0 : i32
    %12 = arith.cmpi ne, %11, %c0_i32_10 : i32
    scf.if %12 {
      %c0_11 = arith.constant 0 : index
      %c0_12 = arith.constant 0 : index
      %13 = vector.load %arg14[%c0_11, %c0_12] : memref<1x8xf32, #tpu.memory_space<vmem>>, vector<1x8xf32>
      %c0_13 = arith.constant 0 : index
      %c0_14 = arith.constant 0 : index
      %c0_15 = arith.constant 0 : index
      %14 = vector.load %arg11[%c0_13, %c0_14, %c0_15] : memref<1x1x8xf32, #tpu.memory_space<vmem>>, vector<1x1x8xf32>
      %15 = vector.shape_cast %14 : vector<1x1x8xf32> to vector<1x8xf32>
      %16 = vector.shape_cast %13 : vector<1x8xf32> to vector<1x1x8xf32>
      tpu.vector_store %arg11[%c0_13, %c0_14, %c0_15], %16 {strides = array<i32>} : memref<1x1x8xf32, #tpu.memory_space<vmem>>, vector<1x1x8xf32>,
    } else {
    }
    return
  }
  func.func @transform_0(%arg0: i32, %arg1: i32) -> (i32, i32, i32) {
    %c0_i32 = arith.constant 0 : i32
    %c0_i32_0 = arith.constant 0 : i32
    %c0_i32_1 = arith.constant 0 : i32
    return %arg0, %c0_i32, %c0_i32_0 : i32, i32, i32
  }
  func.func @transform_1(%arg0: i32, %arg1: i32) -> (i32, i32, i32) {
    %c0_i32 = arith.constant 0 : i32
    %c0_i32_0 = arith.constant 0 : i32
    %c0_i32_1 = arith.constant 0 : i32
    return %arg0, %c0_i32, %c0_i32_0 : i32, i32, i32
  }
  func.func @transform_2(%arg0: i32, %arg1: i32) -> (i32, i32, i32) {
    %c0_i32 = arith.constant 0 : i32
    %c0_i32_0 = arith.constant 0 : i32
    return %arg0, %arg1, %c0_i32 : i32, i32, i32
  }
  func.func @transform_3(%arg0: i32, %arg1: i32) -> (i32, i32) {
    %c0_i32 = arith.constant 0 : i32
    %c0_i32_0 = arith.constant 0 : i32
    %c0_i32_1 = arith.constant 0 : i32
    return %c0_i32, %c0_i32_0 : i32, i32
  }
  func.func @transform_4(%arg0: i32, %arg1: i32) -> (i32, i32) {
    %c0_i32 = arith.constant 0 : i32
    %c0_i32_0 = arith.constant 0 : i32
    %c0_i32_1 = arith.constant 0 : i32
    return %c0_i32, %c0_i32_0 : i32, i32
  }
  func.func @transform_5(%arg0: i32, %arg1: i32) -> (i32, i32) {
    %c0_i32 = arith.constant 0 : i32
    %c0_i32_0 = arith.constant 0 : i32
    %c0_i32_1 = arith.constant 0 : i32
    return %c0_i32, %c0_i32_0 : i32, i32
  }
  func.func @transform_6(%arg0: i32, %arg1: i32) -> (i32, i32) {
    %c0_i32 = arith.constant 0 : i32
    %c0_i32_0 = arith.constant 0 : i32
    %c0_i32_1 = arith.constant 0 : i32
    return %c0_i32, %c0_i32_0 : i32, i32
  }
  func.func @transform_7(%arg0: i32, %arg1: i32) -> (i32, i32) {
    %c0_i32 = arith.constant 0 : i32
    %c0_i32_0 = arith.constant 0 : i32
    %c0_i32_1 = arith.constant 0 : i32
    return %c0_i32, %c0_i32_0 : i32, i32
  }
  func.func @transform_8(%arg0: i32, %arg1: i32) -> (i32, i32) {
    %c0_i32 = arith.constant 0 : i32
    %c0_i32_0 = arith.constant 0 : i32
    %c0_i32_1 = arith.constant 0 : i32
    return %c0_i32, %c0_i32_0 : i32, i32
  }
  func.func @transform_9(%arg0: i32, %arg1: i32) -> (i32, i32, i32) {
    %c0_i32 = arith.constant 0 : i32
    %c0_i32_0 = arith.constant 0 : i32
    %c0_i32_1 = arith.constant 0 : i32
    return %arg0, %c0_i32, %c0_i32_0 : i32, i32, i32
  }
  func.func @transform_10(%arg0: i32, %arg1: i32) -> (i32, i32, i32) {
    %c0_i32 = arith.constant 0 : i32
    %c0_i32_0 = arith.constant 0 : i32
    %c0_i32_1 = arith.constant 0 : i32
    return %arg0, %c0_i32, %c0_i32_0 : i32, i32, i32
  }
}

</mosaic_0001>

<bundles_post_ra>
// kernel: tpu_custom_call.1
= control target key start
LH: loop header
LB: loop body
LE: loop exit
PB: predicated region body
PF: predicated region fallthrough
CT: control target
= control target key end

     0   :  { %s2262_s0 = inlined_call_operand.vmem [shape: f32[2,1,29], index: 0, kind: input, shape index: {}]   ;;  %s2263_s1 = inlined_call_operand.vmem [shape: f32[2,16,1], index: 1, kind: input, shape index: {}]   ;;  %s2264_s2 = inlined_call_operand.vmem [shape: f32[2,16,8], index: 2, kind: input, shape index: {}]   ;;  %s2265_s3 = inlined_call_operand.vmem [shape: f32[32,16], index: 3, kind: input, shape index: {}]   ;;  %s2266_s4 = inlined_call_operand.vmem [shape: f32[32,1], index: 4, kind: input, shape index: {}]   ;;  %s2267_s5 = inlined_call_operand.vmem [shape: f32[160,32], index: 5, kind: input, shape index: {}]   ;;  %s2268_s6 = inlined_call_operand.vmem [shape: f32[32,7], index: 6, kind: input, shape index: {}]   ;;  %s2269_s7 = inlined_call_operand.vmem [shape: f32[32,1], index: 7, kind: input, shape index: {}]   ;;  %s2270_s8 = inlined_call_operand.vmem [shape: f32[1,32], index: 8, kind: input, shape index: {}]   ;;  %s2271_s9 = inlined_call_operand.hbm [shape: f32[2,1,8], index: 9, kind: output, shape index: {0}]   ;;  %s2272_s10 = inlined_call_operand.hbm [shape: f32[2,1,16], index: 10, kind: output, shape index: {1}]  }
   0x1   :  { %2284 = sst [smem:[#allocation10_spill]] %s2262_s0 }
   0x2   :  { %2285 = sst [smem:[#allocation11_spill]] %s2263_s1 }
   0x3   :  { %2286 = sst [smem:[#allocation12_spill]] %s2264_s2 }
   0x4   :  { %2287 = sst [smem:[#allocation13_spill]] %s2265_s3 }
   0x5   :  { %2288 = sst [smem:[#allocation14_spill]] %s2266_s4 }
   0x6   :  { %16 = vsyncpa [#allocation5], 0 }
   0x7   :  { %18 = vsyncpa [#allocation5 + $0x1], 0 }
   0x8   :  { %19 = vsyncpa [#allocation7], 0 }
   0x9   :  { %21 = vsyncpa [#allocation7 + $0x1], 0  ;;  %s1844_s13 = smov 0   ;;  %s1846_s14 = smov 0  }
   0xa   :  { %s1848_s15 = smov 0   ;;  %s1850_s16 = smov 0  }
   0xb   :  { %s1852_s17 = smov 0   ;;  %s1854_s18 = smov 0  }
   0xc LB: > { %s1479_s19 = sadd.s32 4294967295, %s1769_s18   ;;  %s1480_s20 = sadd.s32 4294967294, %s1769_s18   ;;  %s1769_s18 = sphi %s1854_s18, %s27_s18   ;;  %s1765_s17 = sphi %s1852_s17, %s2306_s17   ;;  %s1761_s16 = sphi %s1850_s16, %s2305_s16   ;;  %s1757_s15 = sphi %s1848_s15, %s2304_s15   ;;  %s1753_s14 = sphi %s1846_s14, %s2303_s14   ;;  %s1749_s13 = sphi %s1844_s13, %s2302_s13  }
   0xd   : > { %s39_s21 = sadd.s32 1, %s1765_s17  ;;  %s252_s22 = sadd.s32 1, %s1757_s15 }
   0xe   : > { %p41_p0 = scmp.ge.s32.totalorder %s39_s21, 2  ;;  %p262_p1 = scmp.ne.s32.totalorder %s1757_s15, %s1753_s14 }
   0xf   : > { %p263_p2 = scmp.eq.s32.totalorder %s1479_s19, 1  ;;  %p268_p3 = scmp.ne.s32.totalorder %s1753_s14, %s1749_s13 }
  0x10   : > { %s2308_s21 = smov (%p41_p0, %s39_s21), 0  ;;  %p269_p5 = scmp.eq.s32.totalorder %s1480_s20, 1 }
  0x11   : > { %p1884_p4 = por %p263_p2, %p262_p1  ;;  %s249_s24 = ssub.s32 %s1765_s17, %s2308_s21 }
  0x12   : > { %p1483_p6 = scmp.ge.s32.totalorder %s1769_s18, 1  ;;  %p250_p7 = scmp.eq.s32.totalorder %s249_s24, 0 }
  0x13   : > { %p1891_p8 = por %p269_p5, %p268_p3  ;;  %p358_p9 = scmp.lt.s32.totalorder %s1769_s18, 3 }
  0x14   : > { %s1897_s26 = scalar_select %p250_p7, %s1757_s15, %s252_s22  }
  0x15   : > { %p359_p10 = pnand %p1483_p6, %p358_p9 }
  0x16   : > { %p411_p11 = scmp.lt.s32.totalorder (!%p359_p10), %s1761_s16, 1  ;;  %s2291_s1 = sld [smem:[#allocation11_spill]] (!%p359_p10) }
  0x17   : > { %362 = sbr.rel (%p359_p10) target bundleno = 1299 (0x513), region = 56  ;;  %s2292_s3 = sld [smem:[#allocation13_spill]] (!%p359_p10) }
  0x18   : > { %s2293_s0 = sld [smem:[#allocation10_spill]] (!%p359_p10)  ;;  %s2278_s12 = smov (!%p359_p10), 126  }
  0x19   : > { %s2294_s4 = sld [smem:[#allocation14_spill]] (!%p359_p10)  ;;  %s2276_s28 = smov (!%p359_p10), 125  }
  0x1a   : > { %s2280_s11 = smov (!%p359_p10), 123   ;;  %s2301_s2 = sld [smem:[#allocation12_spill]] (!%p359_p10) }
  0x1b   : > { %s2201_s24 = sand.u32 (!%p359_p10), 1, %s1753_s14   ;;  %s1679_s20 = scalar_lea.hbm (!%p359_p10), %s2272_s10, 2 }
  0x1c   : > { %s1901_s27 = scalar_select %p411_p11, %s1761_s16, 1  ;;  %v1906_v0 = vld [vmem:[%s2268_s6 + $0x18] sm:$0xff]  ;;  %v1771_v1 = vmov 2   ;;  %v1772_v2 = vmov 1   ;;  %v714_v3 = vld [vmem:[%s2268_s6 + $0x10] sm:$0xff]  ;;  %vm508_vm0 = vcmask 130048  }
  0x1d   : > { %1609 = vset.pattern.permute.xlu1 %v1771_v1  ;;  %1608 = vset.pattern.permute.xlu0 %v1772_v2  ;;  %v500_v6 = vld [vmem:[%s2292_s3] sm:$0xff]  ;;  %v713_v7 = vld [vmem:[%s2268_s6 + $0x8] sm:$0xff]  ;;  %v1773_v8 = vmov 3   ;;  %v502_v11 = vld [vmem:[%s2292_s3 + $0x10] sm:$0xff]  ;;  %v1774_v12 = vmov 4   ;;  %v1775_v14 = vmov 5  }
  0x1e   : > { %s2273_s30 = sshll.u32 %s1901_s27, 4  ;;  %828 = vperm.xlu1 %1609, %v1906_v0   ;;  %788 = vperm.xlu0 %1608, %v1906_v0   ;;  %v501_v9 = vld [vmem:[%s2292_s3 + $0x8] sm:$0xff]  ;;  %v712_v10 = vld [vmem:[%s2268_s6] sm:$0xff]  ;;  %v503_v13 = vld [vmem:[%s2292_s3 + $0x18] sm:$0xff]  ;;  %v1776_v15 = vmov 6   ;;  %v1777_v16 = vmov 0   ;;  %s1956_s29 = scalar_lea.vmem %s2293_s0, %s1901_s27 }
  0x1f   : > { %s418_s19 = scalar_lea.vmem %s2291_s1, %s2273_s30  ;;  %1611 = vset.pattern.permute.xlu2 %v1771_v1  ;;  %v718_v17 = vld [vmem:[%s2269_s7 + $0x10] sm:$0xff]  ;;  %v719_v18 = vld [vmem:[%s2269_s7 + $0x18] sm:$0xff]  ;;  %v717_v21 = vld [vmem:[%s2269_s7 + $0x8] sm:$0xff]  ;;  %vm574_vm1 = vcmask 261120   ;;  %s2282_s0 = smov 124   ;;  %vm1279_vm2 = vcmask 122880  }
  0x20   : > { %v499_v4 = vld [vmem:[%s418_s19 + $0x8] sm:$0xff]  ;;  %v498_v5 = vld [vmem:[%s418_s19] sm:$0xff]  ;;  %824 = vperm.xlu2 %1611, %v714_v3   ;;  %s2274_s19 = smov 127   ;;  %v506_v36 = vld [vmem:[%s2294_s4 + $0x10] sm:$0xff]  ;;  %s1783_s1 = smov 122   ;;  %vm1293_vm3 = vcmask 57344  }
  0x21   : > { %535 = vmatpush.msra.mxu0 %v499_v4  ;;  %v1962_v22 = vld [vmem:[%s1956_s29] ss:$0 sm:$0xff]  ;;  %v507_v37 = vld [vmem:[%s2294_s4 + $0x18] sm:$0xff]  ;;  %v505_v40 = vld [vmem:[%s2294_s4 + $0x8] sm:$0xff]  ;;  %s1785_s3 = smov 120   ;;  %s1786_s30 = smov 118  }
  0x22   : > { %v716_v33 = vld [vmem:[%s2269_s7] sm:$0xff]  ;;  %v555_v57 = vld [vmem:[%s2267_s5 + $0x8] sm:$0xff]  ;;  %v568_v60 = vld [vmem:[%s2267_s5 + $0x70] sm:$0xff] }
  0x23   : > { %536 = vmatpush.msra.mxu0 %v498_v5  ;;  %v504_v46 = vld [vmem:[%s2294_s4] sm:$0xff]  ;;  %v563_v4 = vld [vmem:[%s2267_s5 + $0x48] sm:$0xff]  ;;  %v569_v5 = vld [vmem:[%s2267_s5 + $0x78] sm:$0xff]  ;;  %s1784_s4 = smov 121  }
  0x24   : > { %1488 = vmatmul.msk.f32.vlgmr.msra.gmra.mxu0 %vm508_vm0, %v500_v6  ;;  %v562_v58 = vld [vmem:[%s2267_s5 + $0x40] sm:$0xff] }
  0x25   : > { %v554_v61 = vld [vmem:[%s2267_s5] sm:$0xff] }
  0x26   : > { %1610 = vset.pattern.permute.xlu1 %v1772_v2  ;;  %784 = vperm.xlu0 %1608, %v714_v3  }
  0x27   : > { %780 = vperm.xlu1 %1610, %v713_v7  }
  0x28   : > { %1612 = vset.pattern.permute.xlu2 %v1773_v8 }
  0x29   : > { %868 = vperm.xlu2 %1612, %v1906_v0  }
  0x2c   : > { %1489 = vmatmul.msk.f32.gmra.mxu0 %vm508_vm0, %v501_v9 }
  0x2e   : > { %776 = vperm.xlu0 %1608, %v712_v10  }
  0x2f   : > { %1613 = vset.pattern.permute.xlu1 %v1771_v1 }
  0x30   : > { %820 = vperm.xlu1 %1613, %v713_v7  }
  0x31   : > { %864 = vperm.xlu2 %1612, %v714_v3  }
  0x34   : > { %1490 = vmatmul.msk.f32.gmra.mxu0 %vm508_vm0, %v502_v11 }
  0x36   : > { %1614 = vset.pattern.permute.xlu0 %v1774_v12 }
  0x37   : > { %908 = vperm.xlu0 %1614, %v1906_v0  }
  0x38   : > { %816 = vperm.xlu1 %1613, %v712_v10  }
  0x39   : > { %860 = vperm.xlu2 %1612, %v713_v7  }
  0x3c   : > { %1491 = vmatmul.msk.f32.gmra.mxu0 %vm508_vm0, %v503_v13  ;;  %v564_v13 = vld [vmem:[%s2267_s5 + $0x50] sm:$0xff] }
  0x3f   : > { %1617 = vset.pattern.permute.xlu0 %v1773_v8 }
  0x40   : > { %1615 = vset.pattern.permute.xlu1 %v1774_v12  ;;  %856 = vperm.xlu0 %1617, %v712_v10  }
  0x41   : > { %904 = vperm.xlu1 %1615, %v714_v3   ;;  %1616 = vset.pattern.permute.xlu2 %v1775_v14 }
  0x42   : > { %948 = vperm.xlu2 %1616, %v1906_v0  }
  0x48   : > { %1620 = vset.pattern.permute.xlu0 %v1775_v14 }
  0x49   : > { %900 = vperm.xlu1 %1615, %v713_v7   ;;  %940 = vperm.xlu0 %1620, %v713_v7  }
  0x4a   : > { %944 = vperm.xlu2 %1616, %v714_v3  }
  0x51   : > { %1618 = vset.pattern.permute.xlu1 %v1776_v15  ;;  %1623 = vset.pattern.permute.xlu0 %v1777_v16 }
  0x52   : > { %988 = vperm.xlu1 %1618, %v1906_v0   ;;  %1619 = vset.pattern.permute.xlu2 %v1774_v12  ;;  %v557_v12 = vld [vmem:[%s2267_s5 + $0x18] sm:$0xff] }
  0x53   : > { %896 = vperm.xlu2 %1619, %v712_v10   ;;  %761 = vperm.xlu0 %1623, %v1906_v0  }
  0x5a   : > { %984 = vperm.xlu1 %1618, %v714_v3  }
  0x5b   : > { %1622 = vset.pattern.permute.xlu2 %v1776_v15  ;;  %732 = vperm.xlu0 %1623, %v718_v17  }
  0x5c   : > { %980 = vperm.xlu2 %1622, %v713_v7  }
  0x62   : > { %1621 = vset.pattern.permute.xlu1 %v1775_v14  ;;  %v570_v14 = vld [vmem:[%s2267_s5 + $0x80] sm:$0xff] }
  0x63   : > { %936 = vperm.xlu1 %1621, %v712_v10   ;;  %727 = vperm.xlu0 %1623, %v717_v21   ;;  %v558_v21 = vld [vmem:[%s2267_s5 + $0x20] sm:$0xff] }
  0x64   : > { %976 = vperm.xlu2 %1622, %v712_v10  }
  0x6b   : > { %1624 = vset.pattern.permute.xlu1 %v1777_v16 }
  0x6c   : > { %1625 = vset.pattern.permute.xlu2 %v1777_v16  ;;  %737 = vperm.xlu1 %1624, %v719_v18  }
  0x6d   : > { %756 = vperm.xlu2 %1625, %v714_v3   ;;  %v556_v3 = vld [vmem:[%s2267_s5 + $0x10] sm:$0xff] }
  0x74   : > { %751 = vperm.xlu1 %1624, %v713_v7  }
  0x7a   : > { %v825_v23 = vpop.permute.xlu2 %824 }
  0x7b   : > { %v833_v32 = vmul.f32 %v1962_v22, %v825_v23  ;;  %v571_v23 = vld [vmem:[%s2267_s5 + $0x88] sm:$0xff] }
  0x7c   : > { %746 = vperm.xlu1 %1624, %v712_v10  }
  0x83   : > { %v869_v29 = vpop.permute.xlu2 %868 }
  0x84   : > { %722 = vperm.xlu1 %1624, %v716_v33   ;;  %v874_v42 = vmul.f32 %v1962_v22, %v869_v29  ;;  %v566_v29 = vld [vmem:[%s2267_s5 + $0x60] sm:$0xff] }
  0x8b   : > { %v865_v38 = vpop.permute.xlu2 %864 }
  0x8c   : > { %885 = vrot.lane.b32.xlu1 %v874_v42, %s2276_s28  ;;  %v873_v62 = vmul.f32 %v1962_v22, %v865_v38  ;;  %s2297_s28 = smov 127   ;;  %v573_v38 = vld [vmem:[%s2267_s5 + $0x98] sm:$0xff] }
  0x90   : > { %v829_v19 = vpop.permute.xlu1 %828  ;;  %v789_v27 = vpop.permute.xlu0 %788 }
  0x91   : > { %v834_v26 = vmul.f32 %v1962_v22, %v829_v19  ;;  %v794_v28 = vmul.f32 %v1962_v22, %v789_v27 }
  0x93   : > { %845 = vrot.lane.b32.xlu0 %v834_v26, %s2278_s12  ;;  %805 = vrot.lane.b32.xlu2 %v794_v28, %s2274_s19  ;;  %v861_v53 = vpop.permute.xlu2 %860 }
  0x94   : > { %v872_v6 = vmul.f32 %v1962_v22, %v861_v53 }
  0x98   : > { %v785_v34 = vpop.permute.xlu0 %784 }
  0x99   : > { %v781_v24 = vpop.permute.xlu1 %780  ;;  %v793_v35 = vmul.f32 %v1962_v22, %v785_v34 }
  0x9a   : > { %v792_v47 = vmul.f32 %v1962_v22, %v781_v24 }
  0x9b   : > { %843 = vrot.lane.b32.xlu0 %v833_v32, %s2278_s12  ;;  %803 = vrot.lane.b32.xlu2 %v793_v35, %s2274_s19 }
  0x9c   : > { %v949_v2 = vpop.permute.xlu2 %948 }
  0x9d   : > { %v954_v7 = vmul.f32 %v1962_v22, %v949_v2 }
  0xa0   : > { %v777_v51 = vpop.permute.xlu0 %776 }
  0xa1   : > { %v538_v20 = vpop.f32.mrf.mxu0  ;;  %v791_v0 = vmul.f32 %v1962_v22, %v777_v51 }
  0xa2   : > { %v821_v30 = vpop.permute.xlu1 %820  ;;  %v539_v49 = vadd.f32 %v538_v20, %v504_v46  ;;  %v565_v20 = vld [vmem:[%s2267_s5 + $0x58] sm:$0xff] }
  0xa3   : > { %v832_v43 = vmul.f32 %v1962_v22, %v821_v30  ;;  %801 = vrot.lane.b32.xlu2 %v792_v47, %s2274_s19  ;;  %s2296_s19 = smov 125   ;;  %v559_v30 = vld [vmem:[%s2267_s5 + $0x28] sm:$0xff] }
  0xa4   : > { %883 = vrot.lane.b32.xlu1 %v873_v62, %s2296_s19  ;;  %v945_v11 = vpop.permute.xlu2 %944 }
  0xa5   : > { %841 = vrot.lane.b32.xlu0 %v832_v43, %s2278_s12  ;;  %s2295_s12 = smov 126   ;;  %v953_v15 = vmul.f32 %v1962_v22, %v945_v11 }
  0xa9   : > { %v541_v25 = vpop.f32.mrf.mxu0  ;;  %v909_v1 = vpop.permute.xlu0 %908 }
  0xaa   : > { %v817_v39 = vpop.permute.xlu1 %816  ;;  %v542_v48 = vadd.f32 %v541_v25, %v505_v40  ;;  %v914_v8 = vmul.f32 %v1962_v22, %v909_v1  ;;  %v561_v40 = vld [vmem:[%s2267_s5 + $0x38] sm:$0xff] }
  0xab   : > { %v831_v63 = vmul.f32 %v1962_v22, %v817_v39  ;;  %799 = vrot.lane.b32.xlu2 %v791_v0, %s2297_s28 }
  0xac   : > { %881 = vrot.lane.b32.xlu1 %v872_v6, %s2296_s19 }
  0xad   : > { %839 = vrot.lane.b32.xlu0 %v831_v63, %s2295_s12  ;;  %v897_v27 = vpop.permute.xlu2 %896 }
  0xae   : > { %v911_v34 = vmul.f32 %v1962_v22, %v897_v27 }
  0xb1   : > { %v544_v31 = vpop.f32.mrf.mxu0 }
  0xb2   : > { %v545_v44 = vadd.f32 %v544_v31, %v506_v36  ;;  %v857_v10 = vpop.permute.xlu0 %856  ;;  %v572_v31 = vld [vmem:[%s2267_s5 + $0x90] sm:$0xff]  ;;  %v567_v36 = vld [vmem:[%s2267_s5 + $0x68] sm:$0xff] }
  0xb3   : > { %v1993_v50 = vpop.permute.xlu1 %904  ;;  %925 = vrot.lane.b32.xlu2 %v914_v8, %s2282_s0  ;;  %v871_v16 = vmul.f32 %v1962_v22, %v857_v10 }
  0xb4   : > { %v913_v17 = vmul.f32 %v1962_v22, %v1993_v50 }
  0xb5   : > { %965 = vrot.lane.b32.xlu0 %v954_v7, %s2280_s11  ;;  %879 = vrot.lane.b32.xlu1 %v871_v16, %s2296_s19 }
  0xb6   : > { %v2086_v35 = vpop.permute.xlu2 %980 }
  0xb9   : > { %v547_v41 = vpop.f32.mrf.mxu0 }
  0xba   : > { %v548_v45 = vadd.f32 %v547_v41, %v507_v37  ;;  %v560_v37 = vld [vmem:[%s2267_s5 + $0x30] sm:$0xff] }
  0xbb   : > { %v901_v59 = vpop.permute.xlu1 %900  ;;  %v941_v19 = vpop.permute.xlu0 %940  ;;  %923 = vrot.lane.b32.xlu2 %v913_v17, %s2282_s0 }
  0xbc   : > { %1637 = vtanh.f32 %v548_v45  ;;  %v952_v25 = vmul.f32 %v1962_v22, %v941_v19  ;;  %v912_v26 = vmul.f32 %v1962_v22, %v901_v59 }
  0xbd   : > { %1639 = vtanh.f32 %v545_v44  ;;  %963 = vrot.lane.b32.xlu0 %v953_v15, %s2280_s11 }
  0xbe   : > { %1641 = vtanh.f32 %v542_v48  ;;  %v2104_v39 = vpop.permute.xlu2 %976 }
  0xbf   : > { %1643 = vtanh.f32 %v539_v49 }
  0xc2   : > { %v1638_v52 = vpop.eup %1637 }
  0xc3   : > { %647 = vmatpush.msrb.mxu0 %v1638_v52  ;;  %1518 = vmatpush.msra.mxu1 %v1638_v52  ;;  %v1640_v54 = vpop.eup %1639 }
  0xc4   : > { %1519 = vmatpush.msra.mxu2 %v1638_v52  ;;  %1520 = vmatpush.msra.mxu3 %v1638_v52  ;;  %v1642_v55 = vpop.eup %1641  ;;  %v989_v9 = vpop.permute.xlu1 %988 }
  0xc5   : > { %648 = vmatpush.msrb.mxu0 %v1640_v54  ;;  %1521 = vmatpush.msra.mxu1 %v1640_v54  ;;  %v1644_v56 = vpop.eup %1643  ;;  %v994_v24 = vmul.f32 %v1962_v22, %v989_v9  ;;  %v762_v42 = vpop.permute.xlu0 %761 }
  0xc6   : > { %1522 = vmatpush.msra.mxu2 %v1640_v54  ;;  %1523 = vmatpush.msra.mxu3 %v1640_v54  ;;  %v770_v45 = vmul.f32 %v1962_v22, %v762_v42 }
  0xc7   : > { %649 = vmatpush.msrb.mxu0 %v1642_v55  ;;  %1524 = vmatpush.msra.mxu1 %v1642_v55  ;;  %v757_v41 = vpop.permute.xlu2 %756 }
  0xc8   : > { %1525 = vmatpush.msra.mxu2 %v1642_v55  ;;  %1526 = vmatpush.msra.mxu3 %v1642_v55  ;;  %v769_v44 = vmul.f32 %v1962_v22, %v757_v41 }
  0xc9   : > { %650 = vmatpush.msrb.mxu0 %v1644_v56  ;;  %1527 = vmatpush.msra.mxu1 %v1644_v56 }
  0xca   : > { %1528 = vmatpush.msra.mxu2 %v1644_v56  ;;  %1529 = vmatpush.msra.mxu3 %v1644_v56 }
  0xcb   : > { %1493 = vmatmul.msk.f32.vlgmr.msra.gmra.mxu1 %vm574_vm1, %v555_v57  ;;  %1500 = vmatmul.msk.f32.vlgmr.msra.gmra.mxu2 %vm574_vm1, %v562_v58 }
  0xcc   : > { %1506 = vmatmul.msk.f32.vlgmr.msra.gmra.mxu3 %vm574_vm1, %v568_v60  ;;  %1492 = vmatmul.msk.f32.vlgmr.msrb.gmra.mxu0 %vm574_vm1, %v554_v61  ;;  %v985_v18 = vpop.permute.xlu1 %984 }
  0xcd   : > { %961 = vrot.lane.b32.xlu0 %v952_v25, %s2280_s11  ;;  %1005 = vrot.lane.b32.xlu1 %v994_v24, %s1783_s1  ;;  %v993_v32 = vmul.f32 %v1962_v22, %v985_v18  ;;  %v733_v46 = vpop.permute.xlu0 %732 }
  0xce   : > { %921 = vrot.lane.b32.xlu2 %v912_v26, %s2282_s0  ;;  %v773_v48 = vadd.f32 %v769_v44, %v733_v46 }
  0xd3   : > { %1494 = vmatmul.msk.f32.gmra.mxu1 %vm574_vm1, %v556_v3  ;;  %1501 = vmatmul.msk.f32.gmra.mxu2 %vm574_vm1, %v563_v4 }
  0xd4   : > { %1507 = vmatmul.msk.f32.gmra.mxu3 %vm574_vm1, %v569_v5 }
  0xd5   : > { %v937_v28 = vpop.permute.xlu1 %936  ;;  %1003 = vrot.lane.b32.xlu1 %v993_v32, %s1783_s1  ;;  %v728_v53 = vpop.permute.xlu0 %727 }
  0xd6   : > { %v951_v33 = vmul.f32 %v1962_v22, %v937_v28  ;;  %919 = vrot.lane.b32.xlu2 %v911_v34, %s2282_s0  ;;  %s2299_s0 = smov 123  }
  0xd8   : > { %959 = vrot.lane.b32.xlu0 %v951_v33, %s2280_s11  ;;  %s2298_s11 = smov 124  }
  0xdb   : > { %1495 = vmatmul.msk.f32.gmra.mxu1 %vm574_vm1, %v557_v12  ;;  %1502 = vmatmul.msk.f32.gmra.mxu2 %vm574_vm1, %v564_v13 }
  0xdc   : > { %1508 = vmatmul.msk.f32.gmra.mxu3 %vm574_vm1, %v570_v14 }
  0xde   : > { %v738_v47 = vpop.permute.xlu1 %737 }
  0xdf   : > { %v774_v49 = vadd.f32 %v770_v45, %v738_v47 }
  0xe3   : > { %1503 = vmatmul.msk.f32.gmra.mxu2 %vm574_vm1, %v565_v20  ;;  %1496 = vmatmul.msk.f32.gmra.mxu1 %vm574_vm1, %v558_v21 }
  0xe4   : > { %1509 = vmatmul.msk.f32.gmra.mxu3 %vm574_vm1, %v571_v23 }
  0xe6   : > { %v752_v54 = vpop.permute.xlu1 %751 }
  0xe7   : > { %v768_v58 = vmul.f32 %v1962_v22, %v752_v54 }
  0xe9   : > { %v772_v1 = vadd.f32 %v768_v58, %v728_v53  ;;  %v992_v53 = vmul.f32 %v1962_v22, %v2086_v35 }
  0xeb   : > { %1504 = vmatmul.msk.f32.gmra.mxu2 %vm574_vm1, %v566_v29  ;;  %1497 = vmatmul.msk.f32.gmra.mxu1 %vm574_vm1, %v559_v30 }
  0xec   : > { %1510 = vmatmul.msk.f32.gmra.mxu3 %vm574_vm1, %v572_v31 }
  0xed   : > { %v806_v43 = vpop.permute.xlu2 %805 }
  0xee   : > { %v814_v51 = vadd.f32 %v806_v43, %v774_v49  ;;  %v747_v56 = vpop.permute.xlu1 %746 }
  0xef   : > { %v767_v59 = vmul.f32 %v1962_v22, %v747_v56 }
  0xf3   : > { %1505 = vmatmul.msk.f32.gmra.mxu2 %vm574_vm1, %v567_v36  ;;  %1498 = vmatmul.msk.f32.gmra.mxu1 %vm574_vm1, %v560_v37 }
  0xf4   : > { %1511 = vmatmul.msk.f32.gmra.mxu3 %vm574_vm1, %v573_v38 }
  0xf5   : > { %v804_v50 = vpop.permute.xlu2 %803 }
  0xf6   : > { %v813_v52 = vadd.f32 %v804_v50, %v773_v48  ;;  %v723_v62 = vpop.permute.xlu1 %722 }
  0xf7   : > { %v771_v63 = vadd.f32 %v767_v59, %v723_v62 }
  0xfb   : > { %1499 = vmatmul.msk.f32.gmra.mxu1 %vm574_vm1, %v561_v40 }
  0xfd   : > { %v802_v0 = vpop.permute.xlu2 %801 }
  0xfe   : > { %v812_v2 = vadd.f32 %v802_v0, %v772_v1  ;;  %v886_v5 = vpop.permute.xlu1 %885 }
 0x105   : > { %v846_v55 = vpop.permute.xlu0 %845  ;;  %v800_v7 = vpop.permute.xlu2 %799 }
 0x106   : > { %v854_v57 = vadd.f32 %v846_v55, %v814_v51  ;;  %v811_v8 = vadd.f32 %v800_v7, %v771_v63  ;;  %v991_v55 = vmul.f32 %v1962_v22, %v2104_v39 }
 0x108   : > { %v894_v6 = vadd.f32 %v886_v5, %v854_v57 }
 0x10d   : > { %v844_v60 = vpop.permute.xlu0 %843  ;;  %v926_v9 = vpop.permute.xlu2 %925 }
 0x10e   : > { %v853_v61 = vadd.f32 %v844_v60, %v813_v52  ;;  %v934_v10 = vadd.f32 %v926_v9, %v894_v6 }
 0x115   : > { %v924_v15 = vpop.permute.xlu2 %923 }
 0x116   : > { %v884_v12 = vpop.permute.xlu1 %883 }
 0x117   : > { %v842_v3 = vpop.permute.xlu0 %841  ;;  %v893_v14 = vadd.f32 %v884_v12, %v853_v61 }
 0x118   : > { %v852_v4 = vadd.f32 %v842_v3, %v812_v2 }
 0x119   : > { %v933_v16 = vadd.f32 %v924_v15, %v893_v14 }
 0x11e   : > { %v882_v18 = vpop.permute.xlu1 %881 }
 0x11f   : > { %v840_v11 = vpop.permute.xlu0 %839  ;;  %v892_v21 = vadd.f32 %v882_v18, %v852_v4 }
 0x120   : > { %v851_v13 = vadd.f32 %v840_v11, %v811_v8 }
 0x127   : > { %v966_v17 = vpop.permute.xlu0 %965  ;;  %v880_v31 = vpop.permute.xlu1 %879 }
 0x128   : > { %v974_v20 = vadd.f32 %v966_v17, %v934_v10  ;;  %v922_v23 = vpop.permute.xlu2 %921  ;;  %v2116_v32 = vadd.f32 %v880_v31, %v851_v13 }
 0x129   : > { %v932_v24 = vadd.f32 %v922_v23, %v892_v21 }
 0x12f   : > { %v964_v28 = vpop.permute.xlu0 %963 }
 0x130   : > { %v2114_v30 = vadd.f32 %v964_v28, %v933_v16  ;;  %v2128_v56 = vpop.permute.xlu2 %919 }
 0x13f   : > { %v962_v36 = vpop.permute.xlu0 %961  ;;  %v1006_v40 = vpop.permute.xlu1 %1005 }
 0x140   : > { %v2118_v38 = vadd.f32 %v962_v36, %v932_v24  ;;  %v2120_v41 = vadd.f32 %v1006_v40, %v974_v20 }
 0x147   : > { %v2130_v57 = vpop.permute.xlu1 %1003 }
 0x148   : > { %v655_v19 = vpop.f32.mrf.mxu1 }
 0x149   : > { %1022 = vperm.xlu1 %1624, %v655_v19   ;;  %v652_v26 = vpop.f32.mrf.mxu0 }
 0x14a   : > { %v2132_v59 = vpop.permute.xlu0 %959 }
 0x14e   : > { %v676_v25 = vpop.f32.mrf.mxu2 }
 0x14f   : > { %1105 = vperm.xlu0 %1623, %v676_v25   ;;  %v694_v27 = vpop.f32.mrf.mxu3 }
 0x150   : > { %v658_v29 = vpop.f32.mrf.mxu1 }
 0x151   : > { %1017 = vperm.xlu1 %1624, %v652_v26  }
 0x156   : > { %v679_v33 = vpop.f32.mrf.mxu2 }
 0x157   : > { %1027 = vperm.xlu0 %1623, %v658_v29   ;;  %v697_v34 = vpop.f32.mrf.mxu3 }
 0x158   : > { %v661_v37 = vpop.f32.mrf.mxu1 }
 0x159   : > { %1159 = vperm.xlu1 %1624, %v694_v27   ;;  %1032 = vperm.xlu2 %1625, %v661_v37  }
 0x15e   : > { %v682_v42 = vpop.f32.mrf.mxu2 }
 0x15f   : > { %1110 = vperm.xlu0 %1623, %v679_v33   ;;  %v700_v43 = vpop.f32.mrf.mxu3 }
 0x160   : > { %v664_v44 = vpop.f32.mrf.mxu1 }
 0x161   : > { %1164 = vperm.xlu1 %1624, %v697_v34   ;;  %1193 = vperm.xlu2 %1625, %v700_v43  }
 0x166   : > { %v685_v45 = vpop.f32.mrf.mxu2 }
 0x167   : > { %1115 = vperm.xlu0 %1623, %v682_v42   ;;  %v703_v46 = vpop.f32.mrf.mxu3 }
 0x168   : > { %v667_v47 = vpop.f32.mrf.mxu1 }
 0x169   : > { %1198 = vperm.xlu1 %1624, %v703_v46   ;;  %1061 = vperm.xlu2 %1625, %v664_v44  }
 0x16e   : > { %v688_v48 = vpop.f32.mrf.mxu2 }
 0x16f   : > { %1120 = vperm.xlu0 %1623, %v685_v45   ;;  %v706_v51 = vpop.f32.mrf.mxu3 }
 0x170   : > { %v670_v49 = vpop.f32.mrf.mxu1 }
 0x171   : > { %1066 = vperm.xlu2 %1625, %v667_v47  }
 0x176   : > { %v691_v50 = vpop.f32.mrf.mxu2 }
 0x177   : > { %1154 = vperm.xlu1 %1624, %v691_v50   ;;  %1149 = vperm.xlu0 %1623, %v688_v48   ;;  %v709_v54 = vpop.f32.mrf.mxu3 }
 0x178   : > { %v673_v52 = vpop.f32.mrf.mxu1 }
 0x179   : > { %1203 = vperm.xlu2 %1625, %v706_v51  }
 0x17f   : > { %1076 = vperm.xlu1 %1624, %v673_v52  }
 0x181   : > { %1071 = vperm.xlu2 %1625, %v670_v49  }
 0x187   : > { %1001 = vrot.lane.b32.xlu1 %v992_v53, %s1783_s1 }
 0x189   : > { %1208 = vperm.xlu2 %1625, %v709_v54  }
 0x18f   : > { %999 = vrot.lane.b32.xlu1 %v991_v55, %s1783_s1 }
 0x1b3   : > { %v1033_v58 = vpop.permute.xlu2 %1032 }
 0x1b4   : > { %v1038_v23 = vmul.f32 %v1962_v22, %v1033_v58  ;;  %v931_v58 = vadd.f32 %v2128_v56, %v2116_v32 }
 0x1bb   : > { %v1023_v60 = vpop.permute.xlu1 %1022  ;;  %v1194_v61 = vpop.permute.xlu2 %1193 }
 0x1bc   : > { %v1036_v35 = vmul.f32 %v1962_v22, %v1023_v60  ;;  %v1211_v36 = vmul.f32 %v1962_v22, %v1194_v61 }
 0x1be   : > { %1045 = vrot.lane.b32.xlu2 %v1036_v35, %s2297_s28 }
 0x1c1   : > { %v1106_v62 = vpop.permute.xlu0 %1105 }
 0x1c2   : > { %v1123_v63 = vmul.f32 %v1962_v22, %v1106_v62 }
 0x1c3   : > { %v1018_v0 = vpop.permute.xlu1 %1017  ;;  %v1062_v39 = vpop.permute.xlu2 %1061 }
 0x1c4   : > { %v1035_v1 = vmul.f32 %v1962_v22, %v1018_v0  ;;  %v1079_v2 = vmul.f32 %v1962_v22, %v1062_v39  ;;  %1131 = vrot.lane.b32.xlu1 %v1123_v63, %s2296_s19 }
 0x1c6   : > { %1043 = vrot.lane.b32.xlu2 %v1035_v1, %s2297_s28  ;;  %1087 = vrot.lane.b32.xlu0 %v1079_v2, %s2295_s12  ;;  %v971_v1 = vadd.f32 %v2132_v59, %v931_v58 }
 0x1c9   : > { %v1028_v3 = vpop.permute.xlu0 %1027 }
 0x1ca   : > { %v1037_v11 = vmul.f32 %v1962_v22, %v1028_v3 }
 0x1cb   : > { %v1160_v4 = vpop.permute.xlu1 %1159  ;;  %v1067_v5 = vpop.permute.xlu2 %1066 }
 0x1cc   : > { %v1169_v6 = vmul.f32 %v1962_v22, %v1160_v4  ;;  %v1080_v7 = vmul.f32 %v1962_v22, %v1067_v5 }
 0x1ce   : > { %1179 = vrot.lane.b32.xlu2 %v1169_v6, %s2298_s11  ;;  %1089 = vrot.lane.b32.xlu0 %v1080_v7, %s2295_s12 }
 0x1d1   : > { %v1111_v8 = vpop.permute.xlu0 %1110 }
 0x1d2   : > { %v1124_v9 = vmul.f32 %v1962_v22, %v1111_v8 }
 0x1d3   : > { %v1204_v10 = vpop.permute.xlu2 %1203  ;;  %v1165_v12 = vpop.permute.xlu1 %1164 }
 0x1d4   : > { %1133 = vrot.lane.b32.xlu1 %v1124_v9, %s2296_s19  ;;  %v1170_v16 = vmul.f32 %v1962_v22, %v1165_v12  ;;  %v1213_v34 = vmul.f32 %v1962_v22, %v1204_v10 }
 0x1d6   : > { %1047 = vrot.lane.b32.xlu2 %v1037_v11, %s2297_s28 }
 0x1d9   : > { %v1116_v13 = vpop.permute.xlu0 %1115 }
 0x1da   : > { %v1125_v14 = vmul.f32 %v1962_v22, %v1116_v13 }
 0x1db   : > { %v1072_v15 = vpop.permute.xlu2 %1071  ;;  %v1199_v18 = vpop.permute.xlu1 %1198 }
 0x1dc   : > { %v1081_v17 = vmul.f32 %v1962_v22, %v1072_v15  ;;  %1135 = vrot.lane.b32.xlu1 %v1125_v14, %s2296_s19  ;;  %v1212_v33 = vmul.f32 %v1962_v22, %v1199_v18 }
 0x1de   : > { %1181 = vrot.lane.b32.xlu2 %v1170_v16, %s2298_s11  ;;  %1091 = vrot.lane.b32.xlu0 %v1081_v17, %s2295_s12 }
 0x1e1   : > { %v1121_v19 = vpop.permute.xlu0 %1120 }
 0x1e2   : > { %v1126_v20 = vmul.f32 %v1962_v22, %v1121_v19 }
 0x1e3   : > { %v1209_v21 = vpop.permute.xlu2 %1208 }
 0x1e4   : > { %v1214_v24 = vmul.f32 %v1962_v22, %v1209_v21  ;;  %1137 = vrot.lane.b32.xlu1 %v1126_v20, %s2296_s19 }
 0x1e6   : > { %1049 = vrot.lane.b32.xlu2 %v1038_v23, %s2297_s28  ;;  %1225 = vrot.lane.b32.xlu0 %v1214_v24, %s2299_s0  ;;  %v433_v23 = vld [vmem:[%s1956_s29] sm:$0x1]  ;;  %s1787_s29 = smov 119  }
 0x1e7   : > { %v435_v24 = vmul.f32 0.013028079, %v433_v23 }
 0x1e9   : > { %v1155_v25 = vpop.permute.xlu1 %1154  ;;  %v1150_v26 = vpop.permute.xlu0 %1149 }
 0x1ea   : > { %v1167_v27 = vmul.f32 %v1962_v22, %v1150_v26  ;;  %v1168_v28 = vmul.f32 %v1962_v22, %v1155_v25  ;;  %v441_v25 = vmul.f32 0.013751862, %v433_v23  ;;  %v453_v26 = vmul.f32 0.01675879, %v433_v23 }
 0x1ec   : > { %1175 = vrot.lane.b32.xlu1 %v1167_v27, %s2298_s11  ;;  %v459_v27 = vmul.f32 0.0193219, %v433_v23 }
 0x1ee   : > { %1177 = vrot.lane.b32.xlu2 %v1168_v28, %s2298_s11  ;;  %v471_v28 = vmul.f32 0.029470405, %v433_v23 }
 0x1f1   : > { %v1077_v29 = vpop.permute.xlu1 %1076 }
 0x1f2   : > { %v1082_v31 = vmul.f32 %v1962_v22, %v1077_v29  ;;  %v1013_v22 = vadd.f32 %v2130_v57, %v2114_v30  ;;  %v477_v29 = vmul.f32 0.04157432, %v433_v23 }
 0x1f4   : > { %1093 = vrot.lane.b32.xlu0 %v1082_v31, %s2295_s12  ;;  %v489_v31 = vmul.f32 0.7400229, %v433_v23 }
 0x1f6   : > { %1221 = vrot.lane.b32.xlu2 %v1212_v33, %s2299_s0  ;;  %v447_v33 = vmul.f32 0.014978553, %v433_v23 }
 0x1f9   : > { %v1002_v42 = vpop.permute.xlu1 %1001 }
 0x1fa   : > { %v1012_v0 = vadd.f32 %v1002_v42, %v2118_v38 }
 0x1fc   : > { %1223 = vrot.lane.b32.xlu0 %v1213_v34, %s2299_s0  ;;  %v465_v34 = vmul.f32 0.023170572, %v433_v23 }
 0x201   : > { %v1000_v45 = vpop.permute.xlu1 %999 }
 0x202   : > { %v1011_v5 = vadd.f32 %v1000_v45, %v971_v1 }
 0x204   : > { %1219 = vrot.lane.b32.xlu0 %v1211_v36, %s2299_s0  ;;  %v483_v36 = vmul.f32 0.07474979, %v433_v23 }
 0x20c   : > { %437 = vrot.lane.b32.xlu0 %v435_v24, %s2297_s28 }
 0x214   : > { %455 = vrot.lane.b32.xlu0 %v453_v26, %s2298_s11 }
 0x218   : > { %v1046_v37 = vpop.permute.xlu2 %1045 }
 0x219   : > { %v1056_v4 = vadd.f32 %v1046_v37, %v1012_v0 }
 0x21c   : > { %473 = vrot.lane.b32.xlu0 %v471_v28, %s1784_s4 }
 0x220   : > { %v1044_v40 = vpop.permute.xlu2 %1043 }
 0x221   : > { %v1055_v6 = vadd.f32 %v1044_v40, %v1011_v5 }
 0x224   : > { %491 = vrot.lane.b32.xlu0 %v489_v31, %s1786_s30 }
 0x228   : > { %v1180_v43 = vpop.permute.xlu2 %1179 }
 0x230   : > { %v1048_v46 = vpop.permute.xlu2 %1047 }
 0x231   : > { %v1057_v55 = vadd.f32 %v1048_v46, %v1013_v22  ;;  %v1235_v46 = vld [vmem:[%s2270_s8] sm:$0x1] }
 0x236   : > { %v1132_v47 = vpop.permute.xlu1 %1131 }
 0x238   : > { %v1088_v44 = vpop.permute.xlu0 %1087  ;;  %v1182_v49 = vpop.permute.xlu2 %1181 }
 0x239   : > { %v1099_v8 = vadd.f32 %v1088_v44, %v1055_v6 }
 0x23b   : > { %v1143_v12 = vadd.f32 %v1132_v47, %v1099_v8  ;;  %v434_v47 = vmul.f32 0.013172835, %v433_v23 }
 0x240   : > { %v1090_v48 = vpop.permute.xlu0 %1089  ;;  %v1050_v52 = vpop.permute.xlu2 %1049 }
 0x241   : > { %v1058_v60 = vadd.f32 %v1050_v52, %v2120_v41  ;;  %v1100_v57 = vadd.f32 %v1090_v48, %v1056_v4 }
 0x246   : > { %v1134_v50 = vpop.permute.xlu1 %1133 }
 0x247   : > { %v1144_v56 = vadd.f32 %v1134_v50, %v1100_v57 }
 0x248   : > { %v1178_v62 = vpop.permute.xlu2 %1177 }
 0x249   : > { %v1188_v38 = vadd.f32 %v1178_v62, %v1144_v56 }
 0x24e   : > { %v1136_v53 = vpop.permute.xlu1 %1135 }
 0x250   : > { %v1092_v51 = vpop.permute.xlu0 %1091  ;;  %v1222_v10 = vpop.permute.xlu2 %1221 }
 0x251   : > { %v1101_v61 = vadd.f32 %v1092_v51, %v1057_v55  ;;  %v1232_v59 = vadd.f32 %v1222_v10, %v1188_v38 }
 0x253   : > { %v1145_v2 = vadd.f32 %v1136_v53, %v1101_v61 }
 0x255   : > { %v1189_v32 = vadd.f32 %v1180_v43, %v1145_v2 }
 0x256   : > { %v1138_v39 = vpop.permute.xlu1 %1137 }
 0x258   : > { %v1226_v54 = vpop.permute.xlu0 %1225 }
 0x25e   : > { %v1176_v11 = vpop.permute.xlu1 %1175 }
 0x25f   : > { %v1187_v13 = vadd.f32 %v1176_v11, %v1143_v12  ;;  %v1788_v11 = vmov 0.0  }
 0x260   : > { %1294 = vst.msk [vmem:[#allocation3] sm:$0x1] %vm1293_vm3, %v1788_v11 }
 0x266   : > { %v1094_v35 = vpop.permute.xlu0 %1093 }
 0x267   : > { %v1102_v63 = vadd.f32 %v1094_v35, %v1058_v60 }
 0x269   : > { %v1146_v3 = vadd.f32 %v1138_v39, %v1102_v63 }
 0x26b   : > { %v1190_v30 = vadd.f32 %v1182_v49, %v1146_v3 }
 0x26d   : > { %v1234_v7 = vadd.f32 %v1226_v54, %v1190_v30 }
 0x26e   : > { %v1224_v41 = vpop.permute.xlu0 %1223 }
 0x26f   : > { %v1233_v9 = vadd.f32 %v1224_v41, %v1189_v32  ;;  %1645 = vtanh.f32 %v1234_v7 }
 0x271   : > { %1647 = vtanh.f32 %v1233_v9 }
 0x272   : > { %1649 = vtanh.f32 %v1232_v59 }
 0x275   : > { %v1646_v14 = vpop.eup %1645 }
 0x276   : > { %v1220_v15 = vpop.permute.xlu0 %1219 }
 0x277   : > { %v1648_v16 = vpop.eup %1647  ;;  %v1231_v17 = vadd.f32 %v1220_v15, %v1187_v13 }
 0x278   : > { %v1626_v18 = vpack.i.bf16 %v1648_v16, %v1646_v14  ;;  %v1650_v19 = vpop.eup %1649 }
 0x279   : > { %1651 = vtanh.f32 %v1231_v17 }
 0x27a   : > { %1627 = vrot.lane.b32.xlu1 %v1626_v18, %s1784_s4 }
 0x27e   : > { %v438_v48 = vpop.permute.xlu0 %437 }
 0x27f   : > { %v1652_v20 = vpop.eup %1651  ;;  %v440_v49 = vadd.f32 %v438_v48, %v434_v47 }
 0x280   : > { %v1631_v21 = vpack.i.bf16 %v1652_v20, %v1650_v19 }
 0x282   : > { %1632 = vrot.lane.b32.xlu2 %v1631_v21, %s1784_s4  ;;  %443 = vrot.lane.b32.xlu1 %v441_v25, %s2295_s12  ;;  %s1357_s4 = scalar_lea.hbm %s2272_s10, %s1761_s16 }
 0x283   : > { %s1361_s30 = sshll.u32 %s1357_s4, 4  ;;  %s1362_s30 = int_to_ptr.hbm [resolvable:$true] %s1361_s30 }
 0x284   : > { %s1673_s12 = sshra.s32 %s1362_s30, 4  ;;  %s1674_s12 = int_to_ptr.hbm [resolvable:$true] %s1673_s12 }
 0x285   : > { %s1675_s28 = scalar_lea.hbm %s1674_s12, 1  ;;  %p1680_p1 = scmp.lt.s32.totalorder %s1674_s12, %s2272_s10 }
 0x286   : > { %v456_v54 = vpop.permute.xlu0 %455  ;;  %p1676_p12 = scmp.ne.s32.totalorder %s1674_s12, %s1675_s28  ;;  %p1681_p2 = scmp.lt.s32.totalorder %s1679_s20, %s1675_s28 }
 0x288   : > { %p1677_p13 = pnand %p1676_p12, %p1884_p4  ;;  %p1682_p3 = por %p1681_p2, %p1680_p1 }
 0x28a   : > { %461 = vrot.lane.b32.xlu1 %v459_v27, %s2299_s0  ;;  %449 = vrot.lane.b32.xlu2 %v447_v33, %s2296_s19  ;;  %s2300_s19 = sshll.u32 %s1901_s27, 4  ;;  %s410_s27 = scalar_lea.vmem [#allocation6], %s2201_s24 }
 0x28b   : > { %s427_s22 = scalar_lea.vmem %s2301_s2, %s2300_s19  ;;  %p1678_p0 = pneg %p1677_p13 }
 0x28c   : > { %v1297_v10 = vld [vmem:[%s427_s22 + $0x8] sm:$0xff]  ;;  %v1296_v38 = vld [vmem:[%s427_s22] sm:$0xff] }
 0x28d   : > { %1317 = vmatpush.msrb.mxu3 %v1297_v10  ;;  %p1683_p5 = pnand %p1682_p3, %p1678_p0 }
 0x28e   : > { %v474_v35 = vpop.permute.xlu0 %473 }
 0x28f   : > { %1318 = vmatpush.msrb.mxu3 %v1296_v38 }
 0x292   : > { %479 = vrot.lane.b32.xlu1 %v477_v29, %s1785_s3  ;;  %467 = vrot.lane.b32.xlu2 %v465_v34, %s1783_s1  ;;  %s1359_s3 = sshll.u32 %s410_s27, 4  ;;  %s1360_s3 = int_to_ptr.vmem [resolvable:$true] %s1359_s3 }
 0x296   : > { %v492_v2 = vpop.permute.xlu0 %491 }
 0x29a   : > { %485 = vrot.lane.b32.xlu2 %v483_v36, %s1787_s29  ;;  %s1336_s29 = scalar_lea.sflag [#allocation7], %s2201_s24 }
 0x2dc   : > { %v1633_v42 = vpop.permute.xlu2 %1632 }
 0x2dd   : > { %v1634_v44 = vunpack.i.l.bf16 %v1633_v42  ;;  %v1635_v45 = vunpack.i.h.bf16 %v1633_v42 }
 0x2e4   : > { %v450_v52 = vpop.permute.xlu2 %449 }
 0x2ec   : > { %v1628_v37 = vpop.permute.xlu1 %1627  ;;  %v468_v60 = vpop.permute.xlu2 %467 }
 0x2ed   : > { %v1629_v40 = vunpack.i.l.bf16 %v1628_v37  ;;  %v1630_v43 = vunpack.i.h.bf16 %v1628_v37 }
 0x2ef   : > { %1271 = vmatpush.msrb.mxu2 %v1629_v40 }
 0x2f1   : > { %1272 = vmatpush.msrb.mxu2 %v1630_v43 }
 0x2f3   : > { %1273 = vmatpush.msrb.mxu2 %v1634_v44 }
 0x2f4   : > { %v444_v50 = vpop.permute.xlu1 %443  ;;  %v486_v39 = vpop.permute.xlu2 %485 }
 0x2f5   : > { %1274 = vmatpush.msrb.mxu2 %v1635_v45  ;;  %v446_v51 = vadd.f32 %v444_v50, %v440_v49 }
 0x2f6   : > { %1512 = vmatmul.msk.f32.vlgmr.msrb.gmra.mxu2 %vm574_vm1, %v1235_v46 }
 0x2f7   : > { %v452_v53 = vadd.f32 %v450_v52, %v446_v51 }
 0x2f9   : > { %v458_v22 = vadd.f32 %v456_v54, %v452_v53 }
 0x2fc   : > { %v462_v55 = vpop.permute.xlu1 %461 }
 0x2fd   : > { %v464_v58 = vadd.f32 %v462_v55, %v458_v22 }
 0x2ff   : > { %v470_v61 = vadd.f32 %v468_v60, %v464_v58 }
 0x301   : > { %v476_v62 = vadd.f32 %v474_v35, %v470_v61 }
 0x304   : > { %v480_v63 = vpop.permute.xlu1 %479 }
 0x305   : > { %v482_v0 = vadd.f32 %v480_v63, %v476_v62 }
 0x307   : > { %v488_v1 = vadd.f32 %v486_v39, %v482_v0 }
 0x309   : > { %v494_v3 = vadd.f32 %v492_v2, %v488_v1 }
 0x30b   : > { %v495_v4 = vmax.f32 %v494_v3, 1e-06 }
 0x30d   : > { %1653 = vlog2.f32 %v495_v4 }
 0x313   : > { %v1654_v5 = vpop.eup %1653 }
 0x314   : > { %v497_v30 = vmul.f32 0.6931472, %v1654_v5 }
 0x379   : > { %v1276_v57 = vpop.f32.mrf.mxu2 }
 0x37a   : > { %v1277_v6 = vadd.f32 %v1276_v57, %v497_v30 }
 0x37c   : > { %v1280_v7 = vsel %vm1279_vm2, %v1277_v6, -inf }
 0x37d   : > { %1281 = vmax.xlane.f32.xlu1 %v1280_v7 }
 0x3f0   : > { %v1282_v32 = vpop.xlane.xlu1 %1281 }
 0x3f1   : > { %v1283_v56 = vsub.f32 %v1277_v6, %v1282_v32 }
 0x3f3   : > { %v1284_v41 = vmul.f32 1.442695, %v1283_v56 }
 0x3f5   : > { %1655 = vpow2.f32 %v1284_v41 }
 0x3fb   : > { %v1656_v8 = vpop.eup %1655 }
 0x3fc   : > { %v1286_v9 = vsel %vm1279_vm2, %v1656_v8, 0.0 }
 0x3fd   : > { %1287 = vadd.xlane.f32.xlu2 %v1286_v9 }
 0x470   : > { %v1288_v12 = vpop.xlane.xlu2 %1287 }
 0x471   : > { %1657 = vrcp.f32 %v1288_v12 }
 0x477   : > { %v1658_v59 = vpop.eup %1657 }
 0x478   : > { %v1290_v13 = vmul.f32 %v1658_v59, %v1656_v8 }
 0x47a   : > { %1291 = vst.msk [vmem:[#allocation2] sm:$0x1] %vm1279_vm2, %v1290_v13 }
 0x47b   : > { %1292 = vst.msk [vmem:[%s410_s27] sm:$0x1] %vm1279_vm2, %v1290_v13 }
 0x481   : > { %v1295_v14 = vld [vmem:[#allocation2] sm:$0x1] }
 0x482   : > { %1513 = vmatmul.msk.f32.vlgmr.msrb.gmra.mxu3 %vm508_vm0, %v1295_v14 }
 0x483   : > { %1686 = shalt.err (!%p1683_p5)
}
 0x484   : > { %1531 = dma.vmem_to_hbm [thread:$0]  (%p1884_p4), %s1360_s3, 16, %s1362_s30, %s1336_s29   ;;  %v1298_v15 = vld [vmem:[#allocation3] sm:$0x1] }
 0x485   : > { %s1344_s2 = scalar_lea.hbm %s2271_s9, %s1761_s16  ;;  %s404_s0 = scalar_lea.vmem [#allocation4], %s2201_s24 }
 0x486   : > { %s1346_s4 = sshll.u32 %s404_s0, 4  ;;  %s1348_s12 = sshll.u32 %s1344_s2, 4  ;;  %s1347_s4 = int_to_ptr.vmem [resolvable:$true] %s1346_s4  ;;  %s1349_s12 = int_to_ptr.hbm [resolvable:$true] %s1348_s12 }
 0x487   : > { %s1332_s28 = scalar_lea.sflag [#allocation5], %s2201_s24  ;;  %s1701_s3 = sshra.s32 %s1349_s12, 4  ;;  %s1702_s3 = int_to_ptr.hbm [resolvable:$true] %s1701_s3 }
 0x488   : > { %s1703_s30 = scalar_lea.hbm %s1702_s3, 1  ;;  %s1707_s16 = scalar_lea.hbm %s2271_s9, 2 }
 0x489   : > { %p1704_p6 = scmp.ne.s32.totalorder %s1702_s3, %s1703_s30  ;;  %p1708_p10 = scmp.lt.s32.totalorder %s1702_s3, %s2271_s9 }
 0x48a   : > { %p1709_p11 = scmp.lt.s32.totalorder %s1707_s16, %s1703_s30 }
 0x48b   : > { %p1705_p7 = pnand %p1704_p6, %p1884_p4 }
 0x48c   : > { %p1710_p12 = por %p1709_p11, %p1708_p10 }
 0x48d   : > { %p1706_p9 = pneg %p1705_p7 }
 0x48f   : > { %p1711_p13 = pnand %p1710_p12, %p1706_p9 }
 0x505   : > { %v1320_v16 = vpop.f32.mrf.mxu3 }
 0x506   : > { %v1323_v17 = vadd.f32 %v1320_v16, %v1298_v15 }
 0x508   : > { %1325 = vst.msk [vmem:[#allocation3] sm:$0x1] %vm1293_vm3, %v1323_v17 }
 0x50f   : > { %v1329_v18 = vld [vmem:[#allocation3] sm:$0x1] }
 0x510   : > { %1330 = vst.msk [vmem:[%s404_s0] sm:$0x1] %vm1293_vm3, %v1329_v18 }
 0x511   : > { %1714 = shalt.err (!%p1711_p13)
}
 0x512   : > { %1530 = dma.vmem_to_hbm [thread:$0]  (%p1884_p4), %s1347_s4, 16, %s1349_s12, %s1332_s28  }
 0x513 PF: > { %p1541_p0 = scmp.ge.s32.totalorder %s1769_s18, 2  ;;  %s1373_s24 = sand.u32 1, %s1749_s13  }
 0x514   : > { %s1374_s22 = scalar_lea.sflag [#allocation5], %s1373_s24 }
 0x515   : > { %p1535_p1 = pnand %p1541_p0, %p1891_p8 }
 0x517   : > { %p1536_p2 = pneg %p1535_p1 }
 0x519   : > { %1740 = dma.done.wait (%p1536_p2), %s1374_s22, 16  }
 0x51a   : > { %1742 = vsyncadd (%p1536_p2), %s1374_s22, 4294967280  ;;  %s1383_s27 = scalar_lea.sflag [#allocation7], %s1373_s24 }
 0x51b   : > { %1744 = dma.done.wait (%p1536_p2), %s1383_s27, 16  }
 0x51c   : > { %1746 = vsyncadd (%p1536_p2), %s1383_s27, 4294967280  ;;  %s27_s18 = sadd.s32 1, %s1769_s18   ;;  %s2302_s13 = smov %s1753_s14 }
 0x51d   : > { %p24_p3 = scmp.ge.s32.totalorder %s27_s18, 4   ;;  %s2303_s14 = smov %s1757_s15 }
 0x51e   : > { %s2304_s15 = smov %s1897_s26  ;;  %s2305_s16 = smov %s1765_s17 }
 0x51f   : > { %s2306_s17 = smov %s2308_s21  ;;  %26 = sbr.rel (!%p24_p3) target bundleno = 12 (0xc), region = 122 }
 0x524   :  { %1388 = vsyncpa [#allocation5], 1 }
 0x525   :  { %1390 = vsyncpa [#allocation5 + $0x1], 1 }
 0x526   :  { %1391 = vsyncpa [#allocation7], 1 }
 0x527   :  { %1393 = vsyncpa [#allocation7 + $0x1], 1 }

</bundles_post_ra>
